<compile_context>
chip_gen: v5e
topology: v5e:2x2
jax: 0.10.0
libtpu: 0.0.40
codegen_flags: <defaults>
</compile_context>

<pallas_src>
import functools

import jax
import jax.numpy as jnp
from jax.experimental import pallas as pl
from jax.experimental.pallas import tpu as pltpu


def _conv_out_dims(H, W, num_layers):
    """Spatial dims after conv1 (3x3 stride 2) and num_layers-1 (3x3 stride 1)."""
    dims = [((H - 3) // 2 + 1, (W - 3) // 2 + 1)]
    for _ in range(num_layers - 1):
        h, w = dims[-1]
        dims.append((h - 2, w - 2))
    return dims


def _extract_patches_stride2(obs):
    """im2col for the stride-2 3x3 conv.

    (B,C,H,W) -> (Ho*Wo*B, C*9): rows ordered (y, x, b) (position-major,
    batch-minor), columns ordered (c, dy, dx).  Position-major rows make every
    in-kernel step a contiguous row slice (shifted-slice conv taps, per-position
    fc blocks).
    """
    B, C, H, W = obs.shape
    Ho, Wo = (H - 3) // 2 + 1, (W - 3) // 2 + 1
    cols = []
    for c in range(C):
        for dy in range(3):
            for dx in range(3):
                cols.append(obs[:, c,
                                dy:dy + 2 * (Ho - 1) + 1:2,
                                dx:dx + 2 * (Wo - 1) + 1:2])
    p = jnp.stack(cols, axis=-1)                  # (B, Ho, Wo, C*9)
    p = jnp.transpose(p, (1, 2, 0, 3))            # (Ho, Wo, B, C*9)
    return p.reshape(Ho * Wo * B, C * 9)


def _tree_sum(vals):
    """Pairwise sum (shortens the f32 add dependency chain)."""
    while len(vals) > 1:
        nxt = [vals[i] + vals[i + 1] for i in range(0, len(vals) - 1, 2)]
        if len(vals) % 2:
            nxt.append(vals[-1])
        vals = nxt
    return vals[0]


def _make_kernel(B, dims, num_filters, feature_dim, num_layers):
    F = num_filters
    H1, W1 = dims[0]
    P1 = H1 * W1
    R = P1 * B                       # rows of the full-grid activation
    Hl, Wl = dims[-1]
    P_last = Hl * Wl

    def kernel(patches_ref, w1_ref, wl_ref, fcw_ref, par_ref, out_ref, abuf_ref):
        # ---- hoisted parameter rows (read/broadcast once) --------------------
        b1 = par_ref[0:1, :F]
        fc_b = par_ref[num_layers:num_layers + 1, :feature_dim]
        gamma = par_ref[num_layers + 1:num_layers + 2, :feature_dim]
        beta = par_ref[num_layers + 2:num_layers + 3, :feature_dim]

        # ---- conv1 (3x3 stride 2): whole batch, ONE bf16 matmul --------------
        # (the obs/255 scale is folded into w1 host-side)
        h = jnp.dot(patches_ref[...], w1_ref[...],
                    preferred_element_type=jnp.float32)
        h = jnp.maximum(h + b1, 0.0)                       # (R, F) f32

        # ---- stride-1 3x3 convs: 9 whole-grid shifted-slice matmuls / layer --
        # Activation stays on the full H1 x W1 grid: for tap (dy,dx) the input
        # row of output row r is r + (dy*W1 + dx)*B, a uniform contiguous shift.
        # Invalid border rows hold garbage but (VALID padding) never feed valid
        # windows, and the fc only reads valid positions.
        abuf_ref[...] = jnp.zeros_like(abuf_ref)           # zero the shift pad
        for layer in range(1, num_layers):
            abuf_ref[0:R, :] = h.astype(jnp.bfloat16)
            bias_row = par_ref[layer:layer + 1, :F]
            acc = None
            for t in range(9):
                dy, dx = t // 3, t % 3
                s = (dy * W1 + dx) * B
                d = jnp.dot(abuf_ref[s:s + R, :],
                            wl_ref[(layer - 1) * 9 + t],   # bf16 (F, F)
                            preferred_element_type=jnp.float32)
                acc = d if acc is None else acc + d
            h = jnp.maximum(acc + bias_row, 0.0)
            # TODO(synk): on v6e/v7x, K-pack taps (K=9F) if MXU push cadence
            # still binds at the real 84x84 config.

        # ---- fc: whole-batch dot per VALID spatial position, tree-summed -----
        abuf_ref[0:R, :] = h.astype(jnp.bfloat16)
        parts = []
        for pv in range(P_last):
            pf = (pv // Wl) * W1 + (pv % Wl)               # full-grid position
            parts.append(jnp.dot(abuf_ref[pf * B:(pf + 1) * B, :],
                                 fcw_ref[pv],              # bf16 (F, feature_dim)
                                 preferred_element_type=jnp.float32))
        h_fc = _tree_sum(parts) + fc_b                     # (B, feature_dim) f32

        # ---- LayerNorm(feature_dim) (eps=1e-5, affine) + tanh ----------------
        mean = jnp.mean(h_fc, axis=-1, keepdims=True)
        cent = h_fc - mean
        var = jnp.mean(cent * cent, axis=-1, keepdims=True)
        out_ref[...] = jnp.tanh(cent * jax.lax.rsqrt(var + 1e-5) * gamma + beta)

    return kernel


@functools.partial(jax.jit,
                   static_argnames=("feature_dim", "num_layers", "num_filters"))
def pixel_encoder_forward(obs, kparams, *, feature_dim, num_layers, num_filters):
    assert num_layers >= 2, "PixelEncoder uses num_layers in {2, 4, 6}"
    B, C, H, W = obs.shape
    F = num_filters
    dims = _conv_out_dims(H, W, num_layers)
    H1, W1 = dims[0]
    Hl, Wl = dims[-1]
    P1, P_last = H1 * W1, Hl * Wl
    R = P1 * B
    pad_rows = (2 * W1 + 2) * B       # max tap shift -> shifted reads stay in-bounds

    # Integer pixel values are exact in bf16; /255 is folded into w1.
    patches = _extract_patches_stride2(obs).astype(jnp.bfloat16)

    flops = 2 * (R * (C * 9) * F
                 + (num_layers - 1) * 9 * R * F * F
                 + P_last * B * F * feature_dim)
    bytes_accessed = int(patches.size * 2 + kparams["w1"].size * 2
                         + kparams["wl"].size * 2 + kparams["fcw"].size * 2
                         + kparams["biases"].size * 4 + B * feature_dim * 4)

    kernel = _make_kernel(B, dims, F, feature_dim, num_layers)
    vmem = pl.BlockSpec(memory_space=pltpu.MemorySpace.VMEM)
    # TODO(synk): at the real 84x84 / large-batch config, add a batch grid axis
    # marked "parallel" (2nd TC on v7x) and re-tile against 64 MiB VMEM; at B=2
    # a single grid-less call is fastest on every generation.
    return pl.pallas_call(
        kernel,
        out_shape=jax.ShapeDtypeStruct((B, feature_dim), jnp.float32),
        in_specs=[vmem] * 5,
        out_specs=vmem,
        scratch_shapes=[pltpu.VMEM((R + pad_rows, F), jnp.bfloat16)],
        cost_estimate=pl.CostEstimate(flops=int(flops),
                                      transcendentals=int(B * feature_dim + B),
                                      bytes_accessed=bytes_accessed),
    )(patches, kparams["w1"], kparams["wl"], kparams["fcw"], kparams["biases"])


def init_params(key, obs_shape, feature_dim, num_layers, num_filters):
    """PyTorch-like init: U(-1/sqrt(fan_in), 1/sqrt(fan_in)); LN affine = (1, 0)."""
    C, H, W = obs_shape
    Hl, Wl = _conv_out_dims(H, W, num_layers)[-1]
    fc_in = num_filters * Hl * Wl

    def unif(k, shape, fan_in):
        bound = 1.0 / (fan_in ** 0.5)
        return jax.random.uniform(k, shape, jnp.float32, -bound, bound)

    conv_w, conv_b = [], []
    in_ch = C
    for _ in range(num_layers):
        key, kw, kb = jax.random.split(key, 3)
        fan_in = in_ch * 9
        conv_w.append(unif(kw, (num_filters, in_ch, 3, 3), fan_in))
        conv_b.append(unif(kb, (num_filters,), fan_in))
        in_ch = num_filters
    key, kw, kb = jax.random.split(key, 3)
    return {
        "conv_w": conv_w,
        "conv_b": conv_b,
        "fc_w": unif(kw, (feature_dim, fc_in), fc_in),   # PyTorch (out, in) layout
        "fc_b": unif(kb, (feature_dim,), fc_in),
        "ln_w": jnp.ones((feature_dim,), jnp.float32),
        "ln_b": jnp.zeros((feature_dim,), jnp.float32),
    }


def prepare_kernel_params(params, num_layers, obs_shape):
    """Kernel-side layouts: bf16 matmul weights + one fused bias/LN f32 slab.

    Returns (kernel_params, ref_params); ref_params carries the identical
    bf16-rounded *effective* weights as f32 so the pure-JAX reference sees the
    same values (remaining delta vs the kernel is bf16 rounding of in-kernel
    activations fed to the MXU).
    """
    C, H, W = obs_shape
    F = params["conv_w"][0].shape[0]
    feature_dim, fc_in = params["fc_w"].shape
    Hl, Wl = _conv_out_dims(H, W, num_layers)[-1]
    P_last = Hl * Wl
    assert fc_in == F * P_last

    # conv1: (F, C, 3, 3) -> (C*9, F), rows ordered (c, dy, dx) = im2col cols,
    # with the obs/255 scale folded in before the bf16 cast.
    w1 = (params["conv_w"][0].transpose(1, 2, 3, 0).reshape(C * 9, F)
          / 255.0).astype(jnp.bfloat16)
    # stride-1 convs: each (F, F, 3, 3) -> (9, F_in, F_out); flat-stacked.
    wl = jnp.concatenate(
        [w.transpose(2, 3, 1, 0).reshape(9, F, F) for w in params["conv_w"][1:]],
        axis=0).astype(jnp.bfloat16)                  # ((num_layers-1)*9, F, F)
    # fc: PyTorch flatten order is (f, y, x); kernel rows are (y, x) with f on
    # lanes -> (P_last, F, feature_dim) with fcw[p, f, j] = W[j, f*P_last + p].
    fcw = params["fc_w"].reshape(feature_dim, F, P_last).transpose(2, 1, 0)
    fcw = fcw.astype(jnp.bfloat16)

    # All biases + LayerNorm affine in one small f32 operand (fewer DMAs).
    PW = max(F, feature_dim)
    rows = [jnp.pad(b, (0, PW - F)) for b in params["conv_b"]]
    rows.append(jnp.pad(params["fc_b"], (0, PW - feature_dim)))
    rows.append(jnp.pad(params["ln_w"], (0, PW - feature_dim)))
    rows.append(jnp.pad(params["ln_b"], (0, PW - feature_dim)))
    biases = jnp.stack(rows, axis=0).astype(jnp.float32)

    kernel_params = {"w1": w1, "wl": wl, "fcw": fcw, "biases": biases}

    ref_params = dict(params)
    # conv1 effective weight used by the kernel: bf16(W/255) * 255 (exact in f32)
    ref_conv_w = [(params["conv_w"][0] / 255.0).astype(jnp.bfloat16)
                  .astype(jnp.float32) * 255.0]
    ref_conv_w += [w.astype(jnp.bfloat16).astype(jnp.float32)
                   for w in params["conv_w"][1:]]
    ref_params["conv_w"] = ref_conv_w
    ref_params["fc_w"] = params["fc_w"].astype(jnp.bfloat16).astype(jnp.float32)
    return kernel_params, ref_params


def reference_forward(obs, params, num_layers):
    """Pure-JAX mirror of PixelEncoder.forward for correctness checking."""
    x = obs.astype(jnp.float32) / 255.0
    for i in range(num_layers):
        stride = 2 if i == 0 else 1
        x = jax.lax.conv_general_dilated(
            x, params["conv_w"][i], window_strides=(stride, stride),
            padding="VALID", dimension_numbers=("NCHW", "OIHW", "NCHW"),
            precision=jax.lax.Precision.HIGHEST)
        x = jnp.maximum(x + params["conv_b"][i].reshape(1, -1, 1, 1), 0.0)
    h = x.reshape(x.shape[0], -1)
    h_fc = jnp.dot(h, params["fc_w"].T,
                   precision=jax.lax.Precision.HIGHEST) + params["fc_b"]
    mean = jnp.mean(h_fc, axis=-1, keepdims=True)
    var = jnp.mean((h_fc - mean) ** 2, axis=-1, keepdims=True)
    h_norm = (h_fc - mean) / jnp.sqrt(var + 1e-5) * params["ln_w"] + params["ln_b"]
    return jnp.tanh(h_norm)


if __name__ == "__main__":
    # Small shapes consistent with the module: (C,H,W) pixels, 3x3 convs,
    # stride 2 then stride 1, flatten, fc, LayerNorm, tanh.
    B, C, H, W = 2, 4, 16, 16
    FEATURE_DIM = 32
    NUM_LAYERS = 2        # conv stack: C->32 (stride 2), 32->32 (stride 1)
    NUM_FILTERS = 32      # spatial: 16 -> 7 -> 5, fc_in = 32*5*5 = 800

    key = jax.random.PRNGKey(0)
    k_obs, k_par = jax.random.split(key)
    # Integer pixel values (exact in bf16), as a real pixel observation is.
    obs = jax.random.randint(k_obs, (B, C, H, W), 0, 256).astype(jnp.float32)
    params = init_params(k_par, (C, H, W), FEATURE_DIM, NUM_LAYERS, NUM_FILTERS)
    kparams, ref_params = prepare_kernel_params(params, NUM_LAYERS, (C, H, W))

    out = pixel_encoder_forward(
        obs, kparams,
        feature_dim=FEATURE_DIM, num_layers=NUM_LAYERS, num_filters=NUM_FILTERS)
    out = jax.block_until_ready(out)

    ref = reference_forward(obs, ref_params, NUM_LAYERS)
    assert out.shape == (B, FEATURE_DIM)
    err = float(jnp.max(jnp.abs(out - ref)))
    # Weights' bf16 rounding is mirrored in the reference; the remaining delta
    # is bf16 rounding of in-kernel activations fed to the MXU (post-LayerNorm
    # values are unit-scale, so allow ~1e-2 of accumulated rounding).
    assert err < 2e-2, f"mismatch vs reference, max abs err = {err}"
    print("KERNEL_OK")
</pallas_src>

<mosaic_0001>
module attributes {stable_mosaic.version = 11 : i64} {
  func.func @kernel(%arg0: memref<98x36xbf16, #tpu.memory_space<vmem>>, %arg1: memref<36x32xbf16, #tpu.memory_space<vmem>>, %arg2: memref<9x32x32xbf16, #tpu.memory_space<vmem>>, %arg3: memref<25x32x32xbf16, #tpu.memory_space<vmem>>, %arg4: memref<5x32xf32, #tpu.memory_space<vmem>>, %arg5: memref<2x32xf32, #tpu.memory_space<vmem>>, %arg6: memref<130x32xbf16, #tpu.memory_space<vmem>>) attributes {dimension_semantics = [], scalar_prefetch = 0 : i64, scratch_operands = 1 : i64, tpu.core_type = #tpu.core_type<tc>} {
    %c0 = arith.constant 0 : index
    %c0_0 = arith.constant 0 : index
    %0 = vector.load %arg4[%c0, %c0_0] : memref<5x32xf32, #tpu.memory_space<vmem>>, vector<1x32xf32>
    %c2 = arith.constant 2 : index
    %c0_1 = arith.constant 0 : index
    %1 = vector.load %arg4[%c2, %c0_1] : memref<5x32xf32, #tpu.memory_space<vmem>>, vector<1x32xf32>
    %c3 = arith.constant 3 : index
    %c0_2 = arith.constant 0 : index
    %2 = vector.load %arg4[%c3, %c0_2] : memref<5x32xf32, #tpu.memory_space<vmem>>, vector<1x32xf32>
    %c4 = arith.constant 4 : index
    %c0_3 = arith.constant 0 : index
    %3 = vector.load %arg4[%c4, %c0_3] : memref<5x32xf32, #tpu.memory_space<vmem>>, vector<1x32xf32>
    %c0_4 = arith.constant 0 : index
    %c0_5 = arith.constant 0 : index
    %4 = vector.load %arg0[%c0_4, %c0_5] : memref<98x36xbf16, #tpu.memory_space<vmem>>, vector<98x36xbf16>
    %c0_6 = arith.constant 0 : index
    %c0_7 = arith.constant 0 : index
    %5 = vector.load %arg1[%c0_6, %c0_7] : memref<36x32xbf16, #tpu.memory_space<vmem>>, vector<36x32xbf16>
    %cst = arith.constant dense<0.000000e+00> : vector<98x32xf32>
    %6 = tpu.matmul %4, %5, %cst {dimension_numbers = #tpu.dot_dimension_numbers<[1], [0], [0], [1], [0, 0, 1, 1], [], []>} : vector<98x36xbf16>, vector<36x32xbf16>, vector<98x32xf32> -> vector<98x32xf32>
    %7 = vector.broadcast %0 : vector<1x32xf32> to vector<98x32xf32>
    %8 = arith.addf %6, %7 : vector<98x32xf32>
    %cst_8 = arith.constant 0.000000e+00 : f32
    %9 = vector.broadcast %cst_8 : f32 to vector<98x32xf32>
    %10 = arith.maximumf %8, %9 : vector<98x32xf32>
    %cst_9 = arith.constant 0.000000e+00 : bf16
    %11 = vector.broadcast %cst_9 : bf16 to vector<130x32xbf16>
    %c0_10 = arith.constant 0 : index
    %c0_11 = arith.constant 0 : index
    %12 = vector.load %arg6[%c0_10, %c0_11] : memref<130x32xbf16, #tpu.memory_space<vmem>>, vector<130x32xbf16>
    tpu.vector_store %arg6[%c0_10, %c0_11], %11 {strides = array<i32>} : memref<130x32xbf16, #tpu.memory_space<vmem>>, vector<130x32xbf16>,
    %13 = arith.truncf %10 : vector<98x32xf32> to vector<98x32xbf16>
    %c0_12 = arith.constant 0 : index
    %c0_13 = arith.constant 0 : index
    %14 = vector.load %arg6[%c0_12, %c0_13] : memref<130x32xbf16, #tpu.memory_space<vmem>>, vector<98x32xbf16>
    tpu.vector_store %arg6[%c0_12, %c0_13], %13 {strides = array<i32>} : memref<130x32xbf16, #tpu.memory_space<vmem>>, vector<98x32xbf16>,
    %c1 = arith.constant 1 : index
    %c0_14 = arith.constant 0 : index
    %15 = vector.load %arg4[%c1, %c0_14] : memref<5x32xf32, #tpu.memory_space<vmem>>, vector<1x32xf32>
    %c0_15 = arith.constant 0 : index
    %c0_16 = arith.constant 0 : index
    %16 = vector.load %arg6[%c0_15, %c0_16] : memref<130x32xbf16, #tpu.memory_space<vmem>>, vector<98x32xbf16>
    %c0_17 = arith.constant 0 : index
    %c0_18 = arith.constant 0 : index
    %c0_19 = arith.constant 0 : index
    %17 = vector.load %arg2[%c0_17, %c0_18, %c0_19] : memref<9x32x32xbf16, #tpu.memory_space<vmem>>, vector<1x32x32xbf16>
    %18 = vector.shape_cast %17 : vector<1x32x32xbf16> to vector<32x32xbf16>
    %cst_20 = arith.constant dense<0.000000e+00> : vector<98x32xf32>
    %19 = tpu.matmul %16, %18, %cst_20 {dimension_numbers = #tpu.dot_dimension_numbers<[1], [0], [0], [1], [0, 0, 1, 1], [], []>} : vector<98x32xbf16>, vector<32x32xbf16>, vector<98x32xf32> -> vector<98x32xf32>
    %c2_21 = arith.constant 2 : index
    %c0_22 = arith.constant 0 : index
    %20 = vector.load %arg6[%c2_21, %c0_22] : memref<130x32xbf16, #tpu.memory_space<vmem>>, vector<98x32xbf16>
    %c1_23 = arith.constant 1 : index
    %c0_24 = arith.constant 0 : index
    %c0_25 = arith.constant 0 : index
    %21 = vector.load %arg2[%c1_23, %c0_24, %c0_25] : memref<9x32x32xbf16, #tpu.memory_space<vmem>>, vector<1x32x32xbf16>
    %22 = vector.shape_cast %21 : vector<1x32x32xbf16> to vector<32x32xbf16>
    %cst_26 = arith.constant dense<0.000000e+00> : vector<98x32xf32>
    %23 = tpu.matmul %20, %22, %cst_26 {dimension_numbers = #tpu.dot_dimension_numbers<[1], [0], [0], [1], [0, 0, 1, 1], [], []>} : vector<98x32xbf16>, vector<32x32xbf16>, vector<98x32xf32> -> vector<98x32xf32>
    %24 = arith.addf %19, %23 : vector<98x32xf32>
    %c4_27 = arith.constant 4 : index
    %c0_28 = arith.constant 0 : index
    %25 = vector.load %arg6[%c4_27, %c0_28] : memref<130x32xbf16, #tpu.memory_space<vmem>>, vector<98x32xbf16>
    %c2_29 = arith.constant 2 : index
    %c0_30 = arith.constant 0 : index
    %c0_31 = arith.constant 0 : index
    %26 = vector.load %arg2[%c2_29, %c0_30, %c0_31] : memref<9x32x32xbf16, #tpu.memory_space<vmem>>, vector<1x32x32xbf16>
    %27 = vector.shape_cast %26 : vector<1x32x32xbf16> to vector<32x32xbf16>
    %cst_32 = arith.constant dense<0.000000e+00> : vector<98x32xf32>
    %28 = tpu.matmul %25, %27, %cst_32 {dimension_numbers = #tpu.dot_dimension_numbers<[1], [0], [0], [1], [0, 0, 1, 1], [], []>} : vector<98x32xbf16>, vector<32x32xbf16>, vector<98x32xf32> -> vector<98x32xf32>
    %29 = arith.addf %24, %28 : vector<98x32xf32>
    %c14 = arith.constant 14 : index
    %c0_33 = arith.constant 0 : index
    %30 = vector.load %arg6[%c14, %c0_33] : memref<130x32xbf16, #tpu.memory_space<vmem>>, vector<98x32xbf16>
    %c3_34 = arith.constant 3 : index
    %c0_35 = arith.constant 0 : index
    %c0_36 = arith.constant 0 : index
    %31 = vector.load %arg2[%c3_34, %c0_35, %c0_36] : memref<9x32x32xbf16, #tpu.memory_space<vmem>>, vector<1x32x32xbf16>
    %32 = vector.shape_cast %31 : vector<1x32x32xbf16> to vector<32x32xbf16>
    %cst_37 = arith.constant dense<0.000000e+00> : vector<98x32xf32>
    %33 = tpu.matmul %30, %32, %cst_37 {dimension_numbers = #tpu.dot_dimension_numbers<[1], [0], [0], [1], [0, 0, 1, 1], [], []>} : vector<98x32xbf16>, vector<32x32xbf16>, vector<98x32xf32> -> vector<98x32xf32>
    %34 = arith.addf %29, %33 : vector<98x32xf32>
    %c16 = arith.constant 16 : index
    %c0_38 = arith.constant 0 : index
    %35 = vector.load %arg6[%c16, %c0_38] : memref<130x32xbf16, #tpu.memory_space<vmem>>, vector<98x32xbf16>
    %c4_39 = arith.constant 4 : index
    %c0_40 = arith.constant 0 : index
    %c0_41 = arith.constant 0 : index
    %36 = vector.load %arg2[%c4_39, %c0_40, %c0_41] : memref<9x32x32xbf16, #tpu.memory_space<vmem>>, vector<1x32x32xbf16>
    %37 = vector.shape_cast %36 : vector<1x32x32xbf16> to vector<32x32xbf16>
    %cst_42 = arith.constant dense<0.000000e+00> : vector<98x32xf32>
    %38 = tpu.matmul %35, %37, %cst_42 {dimension_numbers = #tpu.dot_dimension_numbers<[1], [0], [0], [1], [0, 0, 1, 1], [], []>} : vector<98x32xbf16>, vector<32x32xbf16>, vector<98x32xf32> -> vector<98x32xf32>
    %39 = arith.addf %34, %38 : vector<98x32xf32>
    %c18 = arith.constant 18 : index
    %c0_43 = arith.constant 0 : index
    %40 = vector.load %arg6[%c18, %c0_43] : memref<130x32xbf16, #tpu.memory_space<vmem>>, vector<98x32xbf16>
    %c5 = arith.constant 5 : index
    %c0_44 = arith.constant 0 : index
    %c0_45 = arith.constant 0 : index
    %41 = vector.load %arg2[%c5, %c0_44, %c0_45] : memref<9x32x32xbf16, #tpu.memory_space<vmem>>, vector<1x32x32xbf16>
    %42 = vector.shape_cast %41 : vector<1x32x32xbf16> to vector<32x32xbf16>
    %cst_46 = arith.constant dense<0.000000e+00> : vector<98x32xf32>
    %43 = tpu.matmul %40, %42, %cst_46 {dimension_numbers = #tpu.dot_dimension_numbers<[1], [0], [0], [1], [0, 0, 1, 1], [], []>} : vector<98x32xbf16>, vector<32x32xbf16>, vector<98x32xf32> -> vector<98x32xf32>
    %44 = arith.addf %39, %43 : vector<98x32xf32>
    %c28 = arith.constant 28 : index
    %c0_47 = arith.constant 0 : index
    %45 = vector.load %arg6[%c28, %c0_47] : memref<130x32xbf16, #tpu.memory_space<vmem>>, vector<98x32xbf16>
    %c6 = arith.constant 6 : index
    %c0_48 = arith.constant 0 : index
    %c0_49 = arith.constant 0 : index
    %46 = vector.load %arg2[%c6, %c0_48, %c0_49] : memref<9x32x32xbf16, #tpu.memory_space<vmem>>, vector<1x32x32xbf16>
    %47 = vector.shape_cast %46 : vector<1x32x32xbf16> to vector<32x32xbf16>
    %cst_50 = arith.constant dense<0.000000e+00> : vector<98x32xf32>
    %48 = tpu.matmul %45, %47, %cst_50 {dimension_numbers = #tpu.dot_dimension_numbers<[1], [0], [0], [1], [0, 0, 1, 1], [], []>} : vector<98x32xbf16>, vector<32x32xbf16>, vector<98x32xf32> -> vector<98x32xf32>
    %49 = arith.addf %44, %48 : vector<98x32xf32>
    %c30 = arith.constant 30 : index
    %c0_51 = arith.constant 0 : index
    %50 = vector.load %arg6[%c30, %c0_51] : memref<130x32xbf16, #tpu.memory_space<vmem>>, vector<98x32xbf16>
    %c7 = arith.constant 7 : index
    %c0_52 = arith.constant 0 : index
    %c0_53 = arith.constant 0 : index
    %51 = vector.load %arg2[%c7, %c0_52, %c0_53] : memref<9x32x32xbf16, #tpu.memory_space<vmem>>, vector<1x32x32xbf16>
    %52 = vector.shape_cast %51 : vector<1x32x32xbf16> to vector<32x32xbf16>
    %cst_54 = arith.constant dense<0.000000e+00> : vector<98x32xf32>
    %53 = tpu.matmul %50, %52, %cst_54 {dimension_numbers = #tpu.dot_dimension_numbers<[1], [0], [0], [1], [0, 0, 1, 1], [], []>} : vector<98x32xbf16>, vector<32x32xbf16>, vector<98x32xf32> -> vector<98x32xf32>
    %54 = arith.addf %49, %53 : vector<98x32xf32>
    %c32 = arith.constant 32 : index
    %c0_55 = arith.constant 0 : index
    %55 = vector.load %arg6[%c32, %c0_55] : memref<130x32xbf16, #tpu.memory_space<vmem>>, vector<98x32xbf16>
    %c8 = arith.constant 8 : index
    %c0_56 = arith.constant 0 : index
    %c0_57 = arith.constant 0 : index
    %56 = vector.load %arg2[%c8, %c0_56, %c0_57] : memref<9x32x32xbf16, #tpu.memory_space<vmem>>, vector<1x32x32xbf16>
    %57 = vector.shape_cast %56 : vector<1x32x32xbf16> to vector<32x32xbf16>
    %cst_58 = arith.constant dense<0.000000e+00> : vector<98x32xf32>
    %58 = tpu.matmul %55, %57, %cst_58 {dimension_numbers = #tpu.dot_dimension_numbers<[1], [0], [0], [1], [0, 0, 1, 1], [], []>} : vector<98x32xbf16>, vector<32x32xbf16>, vector<98x32xf32> -> vector<98x32xf32>
    %59 = arith.addf %54, %58 : vector<98x32xf32>
    %60 = vector.broadcast %15 : vector<1x32xf32> to vector<98x32xf32>
    %61 = arith.addf %59, %60 : vector<98x32xf32>
    %cst_59 = arith.constant 0.000000e+00 : f32
    %62 = vector.broadcast %cst_59 : f32 to vector<98x32xf32>
    %63 = arith.maximumf %61, %62 : vector<98x32xf32>
    %64 = arith.truncf %63 : vector<98x32xf32> to vector<98x32xbf16>
    %c0_60 = arith.constant 0 : index
    %c0_61 = arith.constant 0 : index
    %65 = vector.load %arg6[%c0_60, %c0_61] : memref<130x32xbf16, #tpu.memory_space<vmem>>, vector<98x32xbf16>
    tpu.vector_store %arg6[%c0_60, %c0_61], %64 {strides = array<i32>} : memref<130x32xbf16, #tpu.memory_space<vmem>>, vector<98x32xbf16>,
    %c0_62 = arith.constant 0 : index
    %c0_63 = arith.constant 0 : index
    %66 = vector.load %arg6[%c0_62, %c0_63] : memref<130x32xbf16, #tpu.memory_space<vmem>>, vector<2x32xbf16>
    %c0_64 = arith.constant 0 : index
    %c0_65 = arith.constant 0 : index
    %c0_66 = arith.constant 0 : index
    %67 = vector.load %arg3[%c0_64, %c0_65, %c0_66] : memref<25x32x32xbf16, #tpu.memory_space<vmem>>, vector<1x32x32xbf16>
    %68 = vector.shape_cast %67 : vector<1x32x32xbf16> to vector<32x32xbf16>
    %cst_67 = arith.constant dense<0.000000e+00> : vector<2x32xf32>
    %69 = tpu.matmul %66, %68, %cst_67 {dimension_numbers = #tpu.dot_dimension_numbers<[1], [0], [0], [1], [0, 0, 1, 1], [], []>} : vector<2x32xbf16>, vector<32x32xbf16>, vector<2x32xf32> -> vector<2x32xf32>
    %c2_68 = arith.constant 2 : index
    %c0_69 = arith.constant 0 : index
    %70 = vector.load %arg6[%c2_68, %c0_69] : memref<130x32xbf16, #tpu.memory_space<vmem>>, vector<2x32xbf16>
    %c1_70 = arith.constant 1 : index
    %c0_71 = arith.constant 0 : index
    %c0_72 = arith.constant 0 : index
    %71 = vector.load %arg3[%c1_70, %c0_71, %c0_72] : memref<25x32x32xbf16, #tpu.memory_space<vmem>>, vector<1x32x32xbf16>
    %72 = vector.shape_cast %71 : vector<1x32x32xbf16> to vector<32x32xbf16>
    %cst_73 = arith.constant dense<0.000000e+00> : vector<2x32xf32>
    %73 = tpu.matmul %70, %72, %cst_73 {dimension_numbers = #tpu.dot_dimension_numbers<[1], [0], [0], [1], [0, 0, 1, 1], [], []>} : vector<2x32xbf16>, vector<32x32xbf16>, vector<2x32xf32> -> vector<2x32xf32>
    %c4_74 = arith.constant 4 : index
    %c0_75 = arith.constant 0 : index
    %74 = vector.load %arg6[%c4_74, %c0_75] : memref<130x32xbf16, #tpu.memory_space<vmem>>, vector<2x32xbf16>
    %c2_76 = arith.constant 2 : index
    %c0_77 = arith.constant 0 : index
    %c0_78 = arith.constant 0 : index
    %75 = vector.load %arg3[%c2_76, %c0_77, %c0_78] : memref<25x32x32xbf16, #tpu.memory_space<vmem>>, vector<1x32x32xbf16>
    %76 = vector.shape_cast %75 : vector<1x32x32xbf16> to vector<32x32xbf16>
    %cst_79 = arith.constant dense<0.000000e+00> : vector<2x32xf32>
    %77 = tpu.matmul %74, %76, %cst_79 {dimension_numbers = #tpu.dot_dimension_numbers<[1], [0], [0], [1], [0, 0, 1, 1], [], []>} : vector<2x32xbf16>, vector<32x32xbf16>, vector<2x32xf32> -> vector<2x32xf32>
    %c6_80 = arith.constant 6 : index
    %c0_81 = arith.constant 0 : index
    %78 = vector.load %arg6[%c6_80, %c0_81] : memref<130x32xbf16, #tpu.memory_space<vmem>>, vector<2x32xbf16>
    %c3_82 = arith.constant 3 : index
    %c0_83 = arith.constant 0 : index
    %c0_84 = arith.constant 0 : index
    %79 = vector.load %arg3[%c3_82, %c0_83, %c0_84] : memref<25x32x32xbf16, #tpu.memory_space<vmem>>, vector<1x32x32xbf16>
    %80 = vector.shape_cast %79 : vector<1x32x32xbf16> to vector<32x32xbf16>
    %cst_85 = arith.constant dense<0.000000e+00> : vector<2x32xf32>
    %81 = tpu.matmul %78, %80, %cst_85 {dimension_numbers = #tpu.dot_dimension_numbers<[1], [0], [0], [1], [0, 0, 1, 1], [], []>} : vector<2x32xbf16>, vector<32x32xbf16>, vector<2x32xf32> -> vector<2x32xf32>
    %c8_86 = arith.constant 8 : index
    %c0_87 = arith.constant 0 : index
    %82 = vector.load %arg6[%c8_86, %c0_87] : memref<130x32xbf16, #tpu.memory_space<vmem>>, vector<2x32xbf16>
    %c4_88 = arith.constant 4 : index
    %c0_89 = arith.constant 0 : index
    %c0_90 = arith.constant 0 : index
    %83 = vector.load %arg3[%c4_88, %c0_89, %c0_90] : memref<25x32x32xbf16, #tpu.memory_space<vmem>>, vector<1x32x32xbf16>
    %84 = vector.shape_cast %83 : vector<1x32x32xbf16> to vector<32x32xbf16>
    %cst_91 = arith.constant dense<0.000000e+00> : vector<2x32xf32>
    %85 = tpu.matmul %82, %84, %cst_91 {dimension_numbers = #tpu.dot_dimension_numbers<[1], [0], [0], [1], [0, 0, 1, 1], [], []>} : vector<2x32xbf16>, vector<32x32xbf16>, vector<2x32xf32> -> vector<2x32xf32>
    %c14_92 = arith.constant 14 : index
    %c0_93 = arith.constant 0 : index
    %86 = vector.load %arg6[%c14_92, %c0_93] : memref<130x32xbf16, #tpu.memory_space<vmem>>, vector<2x32xbf16>
    %c5_94 = arith.constant 5 : index
    %c0_95 = arith.constant 0 : index
    %c0_96 = arith.constant 0 : index
    %87 = vector.load %arg3[%c5_94, %c0_95, %c0_96] : memref<25x32x32xbf16, #tpu.memory_space<vmem>>, vector<1x32x32xbf16>
    %88 = vector.shape_cast %87 : vector<1x32x32xbf16> to vector<32x32xbf16>
    %cst_97 = arith.constant dense<0.000000e+00> : vector<2x32xf32>
    %89 = tpu.matmul %86, %88, %cst_97 {dimension_numbers = #tpu.dot_dimension_numbers<[1], [0], [0], [1], [0, 0, 1, 1], [], []>} : vector<2x32xbf16>, vector<32x32xbf16>, vector<2x32xf32> -> vector<2x32xf32>
    %c16_98 = arith.constant 16 : index
    %c0_99 = arith.constant 0 : index
    %90 = vector.load %arg6[%c16_98, %c0_99] : memref<130x32xbf16, #tpu.memory_space<vmem>>, vector<2x32xbf16>
    %c6_100 = arith.constant 6 : index
    %c0_101 = arith.constant 0 : index
    %c0_102 = arith.constant 0 : index
    %91 = vector.load %arg3[%c6_100, %c0_101, %c0_102] : memref<25x32x32xbf16, #tpu.memory_space<vmem>>, vector<1x32x32xbf16>
    %92 = vector.shape_cast %91 : vector<1x32x32xbf16> to vector<32x32xbf16>
    %cst_103 = arith.constant dense<0.000000e+00> : vector<2x32xf32>
    %93 = tpu.matmul %90, %92, %cst_103 {dimension_numbers = #tpu.dot_dimension_numbers<[1], [0], [0], [1], [0, 0, 1, 1], [], []>} : vector<2x32xbf16>, vector<32x32xbf16>, vector<2x32xf32> -> vector<2x32xf32>
    %c18_104 = arith.constant 18 : index
    %c0_105 = arith.constant 0 : index
    %94 = vector.load %arg6[%c18_104, %c0_105] : memref<130x32xbf16, #tpu.memory_space<vmem>>, vector<2x32xbf16>
    %c7_106 = arith.constant 7 : index
    %c0_107 = arith.constant 0 : index
    %c0_108 = arith.constant 0 : index
    %95 = vector.load %arg3[%c7_106, %c0_107, %c0_108] : memref<25x32x32xbf16, #tpu.memory_space<vmem>>, vector<1x32x32xbf16>
    %96 = vector.shape_cast %95 : vector<1x32x32xbf16> to vector<32x32xbf16>
    %cst_109 = arith.constant dense<0.000000e+00> : vector<2x32xf32>
    %97 = tpu.matmul %94, %96, %cst_109 {dimension_numbers = #tpu.dot_dimension_numbers<[1], [0], [0], [1], [0, 0, 1, 1], [], []>} : vector<2x32xbf16>, vector<32x32xbf16>, vector<2x32xf32> -> vector<2x32xf32>
    %c20 = arith.constant 20 : index
    %c0_110 = arith.constant 0 : index
    %98 = vector.load %arg6[%c20, %c0_110] : memref<130x32xbf16, #tpu.memory_space<vmem>>, vector<2x32xbf16>
    %c8_111 = arith.constant 8 : index
    %c0_112 = arith.constant 0 : index
    %c0_113 = arith.constant 0 : index
    %99 = vector.load %arg3[%c8_111, %c0_112, %c0_113] : memref<25x32x32xbf16, #tpu.memory_space<vmem>>, vector<1x32x32xbf16>
    %100 = vector.shape_cast %99 : vector<1x32x32xbf16> to vector<32x32xbf16>
    %cst_114 = arith.constant dense<0.000000e+00> : vector<2x32xf32>
    %101 = tpu.matmul %98, %100, %cst_114 {dimension_numbers = #tpu.dot_dimension_numbers<[1], [0], [0], [1], [0, 0, 1, 1], [], []>} : vector<2x32xbf16>, vector<32x32xbf16>, vector<2x32xf32> -> vector<2x32xf32>
    %c22 = arith.constant 22 : index
    %c0_115 = arith.constant 0 : index
    %102 = vector.load %arg6[%c22, %c0_115] : memref<130x32xbf16, #tpu.memory_space<vmem>>, vector<2x32xbf16>
    %c9 = arith.constant 9 : index
    %c0_116 = arith.constant 0 : index
    %c0_117 = arith.constant 0 : index
    %103 = vector.load %arg3[%c9, %c0_116, %c0_117] : memref<25x32x32xbf16, #tpu.memory_space<vmem>>, vector<1x32x32xbf16>
    %104 = vector.shape_cast %103 : vector<1x32x32xbf16> to vector<32x32xbf16>
    %cst_118 = arith.constant dense<0.000000e+00> : vector<2x32xf32>
    %105 = tpu.matmul %102, %104, %cst_118 {dimension_numbers = #tpu.dot_dimension_numbers<[1], [0], [0], [1], [0, 0, 1, 1], [], []>} : vector<2x32xbf16>, vector<32x32xbf16>, vector<2x32xf32> -> vector<2x32xf32>
    %c28_119 = arith.constant 28 : index
    %c0_120 = arith.constant 0 : index
    %106 = vector.load %arg6[%c28_119, %c0_120] : memref<130x32xbf16, #tpu.memory_space<vmem>>, vector<2x32xbf16>
    %c10 = arith.constant 10 : index
    %c0_121 = arith.constant 0 : index
    %c0_122 = arith.constant 0 : index
    %107 = vector.load %arg3[%c10, %c0_121, %c0_122] : memref<25x32x32xbf16, #tpu.memory_space<vmem>>, vector<1x32x32xbf16>
    %108 = vector.shape_cast %107 : vector<1x32x32xbf16> to vector<32x32xbf16>
    %cst_123 = arith.constant dense<0.000000e+00> : vector<2x32xf32>
    %109 = tpu.matmul %106, %108, %cst_123 {dimension_numbers = #tpu.dot_dimension_numbers<[1], [0], [0], [1], [0, 0, 1, 1], [], []>} : vector<2x32xbf16>, vector<32x32xbf16>, vector<2x32xf32> -> vector<2x32xf32>
    %c30_124 = arith.constant 30 : index
    %c0_125 = arith.constant 0 : index
    %110 = vector.load %arg6[%c30_124, %c0_125] : memref<130x32xbf16, #tpu.memory_space<vmem>>, vector<2x32xbf16>
    %c11 = arith.constant 11 : index
    %c0_126 = arith.constant 0 : index
    %c0_127 = arith.constant 0 : index
    %111 = vector.load %arg3[%c11, %c0_126, %c0_127] : memref<25x32x32xbf16, #tpu.memory_space<vmem>>, vector<1x32x32xbf16>
    %112 = vector.shape_cast %111 : vector<1x32x32xbf16> to vector<32x32xbf16>
    %cst_128 = arith.constant dense<0.000000e+00> : vector<2x32xf32>
    %113 = tpu.matmul %110, %112, %cst_128 {dimension_numbers = #tpu.dot_dimension_numbers<[1], [0], [0], [1], [0, 0, 1, 1], [], []>} : vector<2x32xbf16>, vector<32x32xbf16>, vector<2x32xf32> -> vector<2x32xf32>
    %c32_129 = arith.constant 32 : index
    %c0_130 = arith.constant 0 : index
    %114 = vector.load %arg6[%c32_129, %c0_130] : memref<130x32xbf16, #tpu.memory_space<vmem>>, vector<2x32xbf16>
    %c12 = arith.constant 12 : index
    %c0_131 = arith.constant 0 : index
    %c0_132 = arith.constant 0 : index
    %115 = vector.load %arg3[%c12, %c0_131, %c0_132] : memref<25x32x32xbf16, #tpu.memory_space<vmem>>, vector<1x32x32xbf16>
    %116 = vector.shape_cast %115 : vector<1x32x32xbf16> to vector<32x32xbf16>
    %cst_133 = arith.constant dense<0.000000e+00> : vector<2x32xf32>
    %117 = tpu.matmul %114, %116, %cst_133 {dimension_numbers = #tpu.dot_dimension_numbers<[1], [0], [0], [1], [0, 0, 1, 1], [], []>} : vector<2x32xbf16>, vector<32x32xbf16>, vector<2x32xf32> -> vector<2x32xf32>
    %c34 = arith.constant 34 : index
    %c0_134 = arith.constant 0 : index
    %118 = vector.load %arg6[%c34, %c0_134] : memref<130x32xbf16, #tpu.memory_space<vmem>>, vector<2x32xbf16>
    %c13 = arith.constant 13 : index
    %c0_135 = arith.constant 0 : index
    %c0_136 = arith.constant 0 : index
    %119 = vector.load %arg3[%c13, %c0_135, %c0_136] : memref<25x32x32xbf16, #tpu.memory_space<vmem>>, vector<1x32x32xbf16>
    %120 = vector.shape_cast %119 : vector<1x32x32xbf16> to vector<32x32xbf16>
    %cst_137 = arith.constant dense<0.000000e+00> : vector<2x32xf32>
    %121 = tpu.matmul %118, %120, %cst_137 {dimension_numbers = #tpu.dot_dimension_numbers<[1], [0], [0], [1], [0, 0, 1, 1], [], []>} : vector<2x32xbf16>, vector<32x32xbf16>, vector<2x32xf32> -> vector<2x32xf32>
    %c36 = arith.constant 36 : index
    %c0_138 = arith.constant 0 : index
    %122 = vector.load %arg6[%c36, %c0_138] : memref<130x32xbf16, #tpu.memory_space<vmem>>, vector<2x32xbf16>
    %c14_139 = arith.constant 14 : index
    %c0_140 = arith.constant 0 : index
    %c0_141 = arith.constant 0 : index
    %123 = vector.load %arg3[%c14_139, %c0_140, %c0_141] : memref<25x32x32xbf16, #tpu.memory_space<vmem>>, vector<1x32x32xbf16>
    %124 = vector.shape_cast %123 : vector<1x32x32xbf16> to vector<32x32xbf16>
    %cst_142 = arith.constant dense<0.000000e+00> : vector<2x32xf32>
    %125 = tpu.matmul %122, %124, %cst_142 {dimension_numbers = #tpu.dot_dimension_numbers<[1], [0], [0], [1], [0, 0, 1, 1], [], []>} : vector<2x32xbf16>, vector<32x32xbf16>, vector<2x32xf32> -> vector<2x32xf32>
    %c42 = arith.constant 42 : index
    %c0_143 = arith.constant 0 : index
    %126 = vector.load %arg6[%c42, %c0_143] : memref<130x32xbf16, #tpu.memory_space<vmem>>, vector<2x32xbf16>
    %c15 = arith.constant 15 : index
    %c0_144 = arith.constant 0 : index
    %c0_145 = arith.constant 0 : index
    %127 = vector.load %arg3[%c15, %c0_144, %c0_145] : memref<25x32x32xbf16, #tpu.memory_space<vmem>>, vector<1x32x32xbf16>
    %128 = vector.shape_cast %127 : vector<1x32x32xbf16> to vector<32x32xbf16>
    %cst_146 = arith.constant dense<0.000000e+00> : vector<2x32xf32>
    %129 = tpu.matmul %126, %128, %cst_146 {dimension_numbers = #tpu.dot_dimension_numbers<[1], [0], [0], [1], [0, 0, 1, 1], [], []>} : vector<2x32xbf16>, vector<32x32xbf16>, vector<2x32xf32> -> vector<2x32xf32>
    %c44 = arith.constant 44 : index
    %c0_147 = arith.constant 0 : index
    %130 = vector.load %arg6[%c44, %c0_147] : memref<130x32xbf16, #tpu.memory_space<vmem>>, vector<2x32xbf16>
    %c16_148 = arith.constant 16 : index
    %c0_149 = arith.constant 0 : index
    %c0_150 = arith.constant 0 : index
    %131 = vector.load %arg3[%c16_148, %c0_149, %c0_150] : memref<25x32x32xbf16, #tpu.memory_space<vmem>>, vector<1x32x32xbf16>
    %132 = vector.shape_cast %131 : vector<1x32x32xbf16> to vector<32x32xbf16>
    %cst_151 = arith.constant dense<0.000000e+00> : vector<2x32xf32>
    %133 = tpu.matmul %130, %132, %cst_151 {dimension_numbers = #tpu.dot_dimension_numbers<[1], [0], [0], [1], [0, 0, 1, 1], [], []>} : vector<2x32xbf16>, vector<32x32xbf16>, vector<2x32xf32> -> vector<2x32xf32>
    %c46 = arith.constant 46 : index
    %c0_152 = arith.constant 0 : index
    %134 = vector.load %arg6[%c46, %c0_152] : memref<130x32xbf16, #tpu.memory_space<vmem>>, vector<2x32xbf16>
    %c17 = arith.constant 17 : index
    %c0_153 = arith.constant 0 : index
    %c0_154 = arith.constant 0 : index
    %135 = vector.load %arg3[%c17, %c0_153, %c0_154] : memref<25x32x32xbf16, #tpu.memory_space<vmem>>, vector<1x32x32xbf16>
    %136 = vector.shape_cast %135 : vector<1x32x32xbf16> to vector<32x32xbf16>
    %cst_155 = arith.constant dense<0.000000e+00> : vector<2x32xf32>
    %137 = tpu.matmul %134, %136, %cst_155 {dimension_numbers = #tpu.dot_dimension_numbers<[1], [0], [0], [1], [0, 0, 1, 1], [], []>} : vector<2x32xbf16>, vector<32x32xbf16>, vector<2x32xf32> -> vector<2x32xf32>
    %c48 = arith.constant 48 : index
    %c0_156 = arith.constant 0 : index
    %138 = vector.load %arg6[%c48, %c0_156] : memref<130x32xbf16, #tpu.memory_space<vmem>>, vector<2x32xbf16>
    %c18_157 = arith.constant 18 : index
    %c0_158 = arith.constant 0 : index
    %c0_159 = arith.constant 0 : index
    %139 = vector.load %arg3[%c18_157, %c0_158, %c0_159] : memref<25x32x32xbf16, #tpu.memory_space<vmem>>, vector<1x32x32xbf16>
    %140 = vector.shape_cast %139 : vector<1x32x32xbf16> to vector<32x32xbf16>
    %cst_160 = arith.constant dense<0.000000e+00> : vector<2x32xf32>
    %141 = tpu.matmul %138, %140, %cst_160 {dimension_numbers = #tpu.dot_dimension_numbers<[1], [0], [0], [1], [0, 0, 1, 1], [], []>} : vector<2x32xbf16>, vector<32x32xbf16>, vector<2x32xf32> -> vector<2x32xf32>
    %c50 = arith.constant 50 : index
    %c0_161 = arith.constant 0 : index
    %142 = vector.load %arg6[%c50, %c0_161] : memref<130x32xbf16, #tpu.memory_space<vmem>>, vector<2x32xbf16>
    %c19 = arith.constant 19 : index
    %c0_162 = arith.constant 0 : index
    %c0_163 = arith.constant 0 : index
    %143 = vector.load %arg3[%c19, %c0_162, %c0_163] : memref<25x32x32xbf16, #tpu.memory_space<vmem>>, vector<1x32x32xbf16>
    %144 = vector.shape_cast %143 : vector<1x32x32xbf16> to vector<32x32xbf16>
    %cst_164 = arith.constant dense<0.000000e+00> : vector<2x32xf32>
    %145 = tpu.matmul %142, %144, %cst_164 {dimension_numbers = #tpu.dot_dimension_numbers<[1], [0], [0], [1], [0, 0, 1, 1], [], []>} : vector<2x32xbf16>, vector<32x32xbf16>, vector<2x32xf32> -> vector<2x32xf32>
    %c56 = arith.constant 56 : index
    %c0_165 = arith.constant 0 : index
    %146 = vector.load %arg6[%c56, %c0_165] : memref<130x32xbf16, #tpu.memory_space<vmem>>, vector<2x32xbf16>
    %c20_166 = arith.constant 20 : index
    %c0_167 = arith.constant 0 : index
    %c0_168 = arith.constant 0 : index
    %147 = vector.load %arg3[%c20_166, %c0_167, %c0_168] : memref<25x32x32xbf16, #tpu.memory_space<vmem>>, vector<1x32x32xbf16>
    %148 = vector.shape_cast %147 : vector<1x32x32xbf16> to vector<32x32xbf16>
    %cst_169 = arith.constant dense<0.000000e+00> : vector<2x32xf32>
    %149 = tpu.matmul %146, %148, %cst_169 {dimension_numbers = #tpu.dot_dimension_numbers<[1], [0], [0], [1], [0, 0, 1, 1], [], []>} : vector<2x32xbf16>, vector<32x32xbf16>, vector<2x32xf32> -> vector<2x32xf32>
    %c58 = arith.constant 58 : index
    %c0_170 = arith.constant 0 : index
    %150 = vector.load %arg6[%c58, %c0_170] : memref<130x32xbf16, #tpu.memory_space<vmem>>, vector<2x32xbf16>
    %c21 = arith.constant 21 : index
    %c0_171 = arith.constant 0 : index
    %c0_172 = arith.constant 0 : index
    %151 = vector.load %arg3[%c21, %c0_171, %c0_172] : memref<25x32x32xbf16, #tpu.memory_space<vmem>>, vector<1x32x32xbf16>
    %152 = vector.shape_cast %151 : vector<1x32x32xbf16> to vector<32x32xbf16>
    %cst_173 = arith.constant dense<0.000000e+00> : vector<2x32xf32>
    %153 = tpu.matmul %150, %152, %cst_173 {dimension_numbers = #tpu.dot_dimension_numbers<[1], [0], [0], [1], [0, 0, 1, 1], [], []>} : vector<2x32xbf16>, vector<32x32xbf16>, vector<2x32xf32> -> vector<2x32xf32>
    %c60 = arith.constant 60 : index
    %c0_174 = arith.constant 0 : index
    %154 = vector.load %arg6[%c60, %c0_174] : memref<130x32xbf16, #tpu.memory_space<vmem>>, vector<2x32xbf16>
    %c22_175 = arith.constant 22 : index
    %c0_176 = arith.constant 0 : index
    %c0_177 = arith.constant 0 : index
    %155 = vector.load %arg3[%c22_175, %c0_176, %c0_177] : memref<25x32x32xbf16, #tpu.memory_space<vmem>>, vector<1x32x32xbf16>
    %156 = vector.shape_cast %155 : vector<1x32x32xbf16> to vector<32x32xbf16>
    %cst_178 = arith.constant dense<0.000000e+00> : vector<2x32xf32>
    %157 = tpu.matmul %154, %156, %cst_178 {dimension_numbers = #tpu.dot_dimension_numbers<[1], [0], [0], [1], [0, 0, 1, 1], [], []>} : vector<2x32xbf16>, vector<32x32xbf16>, vector<2x32xf32> -> vector<2x32xf32>
    %c62 = arith.constant 62 : index
    %c0_179 = arith.constant 0 : index
    %158 = vector.load %arg6[%c62, %c0_179] : memref<130x32xbf16, #tpu.memory_space<vmem>>, vector<2x32xbf16>
    %c23 = arith.constant 23 : index
    %c0_180 = arith.constant 0 : index
    %c0_181 = arith.constant 0 : index
    %159 = vector.load %arg3[%c23, %c0_180, %c0_181] : memref<25x32x32xbf16, #tpu.memory_space<vmem>>, vector<1x32x32xbf16>
    %160 = vector.shape_cast %159 : vector<1x32x32xbf16> to vector<32x32xbf16>
    %cst_182 = arith.constant dense<0.000000e+00> : vector<2x32xf32>
    %161 = tpu.matmul %158, %160, %cst_182 {dimension_numbers = #tpu.dot_dimension_numbers<[1], [0], [0], [1], [0, 0, 1, 1], [], []>} : vector<2x32xbf16>, vector<32x32xbf16>, vector<2x32xf32> -> vector<2x32xf32>
    %c64 = arith.constant 64 : index
    %c0_183 = arith.constant 0 : index
    %162 = vector.load %arg6[%c64, %c0_183] : memref<130x32xbf16, #tpu.memory_space<vmem>>, vector<2x32xbf16>
    %c24 = arith.constant 24 : index
    %c0_184 = arith.constant 0 : index
    %c0_185 = arith.constant 0 : index
    %163 = vector.load %arg3[%c24, %c0_184, %c0_185] : memref<25x32x32xbf16, #tpu.memory_space<vmem>>, vector<1x32x32xbf16>
    %164 = vector.shape_cast %163 : vector<1x32x32xbf16> to vector<32x32xbf16>
    %cst_186 = arith.constant dense<0.000000e+00> : vector<2x32xf32>
    %165 = tpu.matmul %162, %164, %cst_186 {dimension_numbers = #tpu.dot_dimension_numbers<[1], [0], [0], [1], [0, 0, 1, 1], [], []>} : vector<2x32xbf16>, vector<32x32xbf16>, vector<2x32xf32> -> vector<2x32xf32>
    %166 = arith.addf %69, %73 : vector<2x32xf32>
    %167 = arith.addf %77, %81 : vector<2x32xf32>
    %168 = arith.addf %85, %89 : vector<2x32xf32>
    %169 = arith.addf %93, %97 : vector<2x32xf32>
    %170 = arith.addf %101, %105 : vector<2x32xf32>
    %171 = arith.addf %109, %113 : vector<2x32xf32>
    %172 = arith.addf %117, %121 : vector<2x32xf32>
    %173 = arith.addf %125, %129 : vector<2x32xf32>
    %174 = arith.addf %133, %137 : vector<2x32xf32>
    %175 = arith.addf %141, %145 : vector<2x32xf32>
    %176 = arith.addf %149, %153 : vector<2x32xf32>
    %177 = arith.addf %157, %161 : vector<2x32xf32>
    %178 = arith.addf %166, %167 : vector<2x32xf32>
    %179 = arith.addf %168, %169 : vector<2x32xf32>
    %180 = arith.addf %170, %171 : vector<2x32xf32>
    %181 = arith.addf %172, %173 : vector<2x32xf32>
    %182 = arith.addf %174, %175 : vector<2x32xf32>
    %183 = arith.addf %176, %177 : vector<2x32xf32>
    %184 = arith.addf %178, %179 : vector<2x32xf32>
    %185 = arith.addf %180, %181 : vector<2x32xf32>
    %186 = arith.addf %182, %183 : vector<2x32xf32>
    %187 = arith.addf %184, %185 : vector<2x32xf32>
    %188 = arith.addf %186, %165 : vector<2x32xf32>
    %189 = arith.addf %187, %188 : vector<2x32xf32>
    %190 = vector.broadcast %1 : vector<1x32xf32> to vector<2x32xf32>
    %191 = arith.addf %189, %190 : vector<2x32xf32>
    %cst_187 = arith.constant dense<0.000000e+00> : vector<2xf32>
    %192 = vector.multi_reduction <add>, %191, %cst_187 [1] : vector<2x32xf32> to vector<2xf32>
    %193 = vector.shape_cast %192 : vector<2xf32> to vector<2x1xf32>
    %cst_188 = arith.constant 3.200000e+01 : f32
    %194 = vector.broadcast %cst_188 : f32 to vector<2x1xf32>
    %195 = arith.divf %193, %194 : vector<2x1xf32>
    %196 = vector.broadcast %195 : vector<2x1xf32> to vector<2x32xf32>
    %197 = arith.subf %191, %196 : vector<2x32xf32>
    %198 = arith.mulf %197, %197 : vector<2x32xf32>
    %cst_189 = arith.constant dense<0.000000e+00> : vector<2xf32>
    %199 = vector.multi_reduction <add>, %198, %cst_189 [1] : vector<2x32xf32> to vector<2xf32>
    %200 = vector.shape_cast %199 : vector<2xf32> to vector<2x1xf32>
    %cst_190 = arith.constant 3.200000e+01 : f32
    %201 = vector.broadcast %cst_190 : f32 to vector<2x1xf32>
    %202 = arith.divf %200, %201 : vector<2x1xf32>
    %cst_191 = arith.constant 9.99999974E-6 : f32
    %203 = vector.broadcast %cst_191 : f32 to vector<2x1xf32>
    %204 = arith.addf %202, %203 : vector<2x1xf32>
    %205 = math.rsqrt %204 : vector<2x1xf32>
    %206 = vector.broadcast %205 : vector<2x1xf32> to vector<2x32xf32>
    %207 = arith.mulf %197, %206 : vector<2x32xf32>
    %208 = vector.broadcast %2 : vector<1x32xf32> to vector<2x32xf32>
    %209 = arith.mulf %207, %208 : vector<2x32xf32>
    %210 = vector.broadcast %3 : vector<1x32xf32> to vector<2x32xf32>
    %211 = arith.addf %209, %210 : vector<2x32xf32>
    %212 = math.tanh %211 : vector<2x32xf32>
    %c0_192 = arith.constant 0 : index
    %c0_193 = arith.constant 0 : index
    %213 = vector.load %arg5[%c0_192, %c0_193] : memref<2x32xf32, #tpu.memory_space<vmem>>, vector<2x32xf32>
    tpu.vector_store %arg5[%c0_192, %c0_193], %212 {strides = array<i32>} : memref<2x32xf32, #tpu.memory_space<vmem>>, vector<2x32xf32>,
    return
  }
}

</mosaic_0001>

<bundles_post_ra>
// kernel: pixel_encoder_forward.1
= control target key start
LH: loop header
LB: loop body
LE: loop exit
PB: predicated region body
PF: predicated region fallthrough
CT: control target
= control target key end

     0   :  { %vm115_vm0 = vcmask 1041408   ;;  %s3882_s0 = inlined_call_operand.vmem [shape: bf16[98,36], index: 0, kind: input, shape index: {}]   ;;  %s3883_s1 = inlined_call_operand.vmem [shape: bf16[36,32], index: 1, kind: input, shape index: {}]   ;;  %s3884_s2 = inlined_call_operand.vmem [shape: bf16[9,32,32], index: 2, kind: input, shape index: {}]   ;;  %s3885_s3 = inlined_call_operand.vmem [shape: bf16[25,32,32], index: 3, kind: input, shape index: {}]   ;;  %s3886_s4 = inlined_call_operand.vmem [shape: f32[5,32], index: 4, kind: input, shape index: {}]   ;;  %s3887_s5 = inlined_call_operand.hbm [shape: f32[2,32], index: 5, kind: output, shape index: {}]  }
   0x1   :  { %v43_v0 = vld [vmem:[%s3883_s1 + $0x10] sm:$0x3] }
   0x2   :  { %v87_v1 = vunpack.c.l.b16 %v43_v0 }
   0x4   :  { %v90_v2 = vpack.c.b16 %v87_v1, %v87_v1 }
   0x5   :  { %10 = vsyncpa [#allocation4], 0  ;;  %v3066_v4 = vld [vmem:[%s3883_s1 + $0x8] sm:$0xff]  ;;  %v3065_v5 = vld [vmem:[%s3883_s1] sm:$0xff]  ;;  %vm93_vm1 = vcmask 293888   ;;  %vm175_vm2 = vcmask 257024  }
   0x6   :  { %v117_v3 = vsel %vm115_vm0, %v90_v2, 0  ;;  %v3059_v6 = vld [vmem:[%s3882_s0] sm:$0xff]  ;;  %v3060_v7 = vld [vmem:[%s3882_s0 + $0x8] sm:$0xff]  ;;  %v3061_v8 = vld [vmem:[%s3882_s0 + $0x10] sm:$0xff]  ;;  %v3214_v15 = vmov 0   ;;  %vm304_vm3 = vcmask 261120  }
   0x7   :  { %124 = vmatpush.bf16.msra.mxu0 %v117_v3  ;;  %v3062_v9 = vld [vmem:[%s3882_s0 + $0x18] sm:$0xff]  ;;  %v3063_v10 = vld [vmem:[%s3882_s0 + $0x20] sm:$0xff]  ;;  %v3064_v11 = vld [vmem:[%s3882_s0 + $0x28] sm:$0xff]  ;;  %176 = vst.msk [vmem:[#allocation2] sm:$0xf] %vm175_vm2, %v3214_v15  ;;  %vm278_vm4 = vcmask 1046528  }
   0x8   :  { %v38_v12 = vld [vmem:[%s3882_s0 + $0x30] sm:$0x1]  ;;  %177 = vst.msk [vmem:[#allocation2 + $0x4] sm:$0xf] %vm175_vm2, %v3214_v15  ;;  %v3073_v16 = vld [vmem:[%s3884_s2 + $0x8] sm:$0xff]  ;;  %v3072_v17 = vld [vmem:[%s3884_s2] sm:$0xff] }
   0x9   :  { %v70_v13 = vunpack.c.l.b16 %v38_v12  ;;  %178 = vst.msk [vmem:[#allocation2 + $0x8] sm:$0xf] %vm175_vm2, %v3214_v15  ;;  %414 = vmatpush.bf16.msra.mxu2 %v3073_v16  ;;  %v3318_v18 = vld [vmem:[%s3886_s4] ss:$0 sm:$0xff]  ;;  %v3075_v21 = vld [vmem:[%s3884_s2 + $0x18] sm:$0xff]  ;;  %v3077_v22 = vld [vmem:[%s3884_s2 + $0x28] sm:$0xff] }
   0xa   :  { %179 = vst.msk [vmem:[#allocation2 + $0xc] sm:$0xf] %vm175_vm2, %v3214_v15  ;;  %332 = vmatpush.bf16.msra.mxu1 %v3075_v21  ;;  %517 = vmatpush.bf16.msra.mxu3 %v3077_v22  ;;  %v3074_v25 = vld [vmem:[%s3884_s2 + $0x10] sm:$0xff]  ;;  %v3076_v26 = vld [vmem:[%s3884_s2 + $0x20] sm:$0xff]  ;;  %v3092_v31 = vld [vmem:[%s3884_s2 + $0x48] sm:$0xff]  ;;  %vm464_vm5 = vcmask 1045504  }
   0xb   :  { %125 = vmatpush.bf16.msra.mxu0 %v3066_v4  ;;  %v77_v14 = vpack.c.b16 %v70_v13, %v70_v13  ;;  %180 = vst.msk [vmem:[#allocation2 + $0x10] sm:$0xf] %vm175_vm2, %v3214_v15  ;;  %v3085_v32 = vld [vmem:[%s3884_s2 + $0x38] sm:$0xff]  ;;  %v3101_v40 = vld [vmem:[%s3884_s2 + $0x68] sm:$0xff]  ;;  %v3100_v43 = vld [vmem:[%s3884_s2 + $0x60] sm:$0xff]  ;;  %vm192_vm6 = vcmask 253952  }
   0xc   :  { %181 = vst.msk [vmem:[#allocation2 + $0x14] sm:$0xf] %vm175_vm2, %v3214_v15  ;;  %vm618_vm7 = vcmask 1044480   ;;  %vm2372_vm8 = vcmask 254976   ;;  %s3216_s17 = smov [#allocation3]   ;;  %s2415_s21 = sshll.u32 %s3887_s5, 4  ;;  %s2416_s21 = int_to_ptr.hbm [resolvable:$true] %s2415_s21 }
   0xd   :  { %182 = vst.msk [vmem:[#allocation2 + $0x18] sm:$0xf] %vm175_vm2, %v3214_v15  ;;  %415 = vmatpush.bf16.msra.mxu2 %v3072_v17  ;;  %s2413_s18 = sshll.u32 %s3216_s17, 4  ;;  %s2414_s18 = int_to_ptr.vmem [resolvable:$true] %s2413_s18 }
   0xe   :  { %183 = vst.msk [vmem:[#allocation2 + $0x1c] sm:$0xf] %vm175_vm2, %v3214_v15  ;;  %333 = vmatpush.bf16.msra.mxu1 %v3074_v25  ;;  %518 = vmatpush.bf16.msra.mxu3 %v3076_v26 }
   0xf   :  { %126 = vmatpush.bf16.msra.mxu0 %v3065_v5  ;;  %184 = vst.msk [vmem:[#allocation2 + $0x20] sm:$0xf] %vm175_vm2, %v3214_v15 }
  0x10   :  { %185 = vst.msk [vmem:[#allocation2 + $0x24] sm:$0xf] %vm175_vm2, %v3214_v15 }
  0x11   :  { %186 = vst.msk [vmem:[#allocation2 + $0x28] sm:$0xf] %vm175_vm2, %v3214_v15  ;;  %811 = vmatpush.bf16.msrb.mxu2 %v3092_v31  ;;  %v3091_v31 = vld [vmem:[%s3884_s2 + $0x40] sm:$0xff] }
  0x12   :  { %2456 = vmatmul.msk.bf16.vlgmr.msra.gmra.mxu0 %vm93_vm1, %v3059_v6  ;;  %187 = vst.msk [vmem:[#allocation2 + $0x2c] sm:$0xf] %vm175_vm2, %v3214_v15  ;;  %671 = vmatpush.bf16.msrb.mxu1 %v3085_v32  ;;  %v3084_v32 = vld [vmem:[%s3884_s2 + $0x30] sm:$0xff] }
  0x13   :  { %188 = vst.msk [vmem:[#allocation2 + $0x30] sm:$0xf] %vm175_vm2, %v3214_v15  ;;  %1079 = vmatpush.bf16.msrb.mxu0 %v3101_v40 }
  0x14   :  { %189 = vst.msk [vmem:[#allocation2 + $0x34] sm:$0xf] %vm175_vm2, %v3214_v15 }
  0x15   :  { %190 = vst.msk [vmem:[#allocation2 + $0x38] sm:$0xf] %vm175_vm2, %v3214_v15  ;;  %812 = vmatpush.bf16.msrb.mxu2 %v3091_v31 }
  0x16   :  { %191 = vst.msk [vmem:[#allocation2 + $0x3c] sm:$0xf] %vm175_vm2, %v3214_v15  ;;  %672 = vmatpush.bf16.msrb.mxu1 %v3084_v32 }
  0x17   :  { %1080 = vmatpush.bf16.msrb.mxu0 %v3100_v43  ;;  %193 = vst.msk [vmem:[#allocation2 + $0x40] sm:$0x1] %vm192_vm6, %v3214_v15 }
  0x22   :  { %2457 = vmatmul.msk.bf16.gmra.mxu0 %vm93_vm1, %v3060_v7 }
  0x32   :  { %2458 = vmatmul.msk.bf16.gmra.mxu0 %vm93_vm1, %v3061_v8 }
  0x42   :  { %2459 = vmatmul.msk.bf16.gmra.mxu0 %vm93_vm1, %v3062_v9 }
  0x52   :  { %2460 = vmatmul.msk.bf16.gmra.mxu0 %vm93_vm1, %v3063_v10 }
  0x62   :  { %2461 = vmatmul.msk.bf16.gmra.mxu0 %vm93_vm1, %v3064_v11 }
  0x72   :  { %2462 = vmatmul.msk.bf16.gmra.mxu0 %vm93_vm1, %v77_v14 }
  0x8f   :  { %v128_v19 = vpop.f32.mrf.mxu0 }
  0x90   :  { %v129_v20 = vadd.f32 %v3318_v18, %v128_v19 }
  0x92   :  { %v162_v23 = vmax.f32 %v129_v20, 0.0 }
  0x94   :  { %v194_v24 = vpack.c.bf16 %v162_v23, %v162_v23 }
  0x96   :  { %207 = vst.msk [vmem:[#allocation2] sm:$0xf] %vm175_vm2, %v194_v24 }
  0x97   :  { %v130_v27 = vpop.f32.mrf.mxu0 }
  0x98   :  { %v131_v28 = vadd.f32 %v3318_v18, %v130_v27 }
  0x9a   :  { %v163_v29 = vmax.f32 %v131_v28, 0.0 }
  0x9c   :  { %v195_v30 = vpack.c.bf16 %v163_v29, %v163_v29 }
  0x9d   :  { %v238_v44 = vld [vmem:[#allocation2] sm:$0xe] }
  0x9e   :  { %208 = vst.msk [vmem:[#allocation2 + $0x4] sm:$0xf] %vm175_vm2, %v195_v30  ;;  %v451_v45 = vld [vmem:[#allocation2] sm:$0xc]  ;;  %v258_v49 = vunpack.c.l.b16 %v238_v44 }
  0x9f   :  { %v133_v33 = vpop.f32.mrf.mxu0  ;;  %v460_v50 = vunpack.c.l.b16 %v451_v45 }
  0xa0   :  { %v134_v34 = vadd.f32 %v3318_v18, %v133_v33 }
  0xa2   :  { %v164_v35 = vmax.f32 %v134_v34, 0.0 }
  0xa4   :  { %v196_v36 = vpack.c.bf16 %v164_v35, %v164_v35 }
  0xa5   :  { %v3163_v37 = vld [vmem:[#allocation2] sm:$0xff]  }
  0xa6   :  { %209 = vst.msk [vmem:[#allocation2 + $0x8] sm:$0xf] %vm175_vm2, %v196_v36  ;;  %2510 = vmatmul.msk.bf16.vlgmr.msra.gmra.mxu2 %vm304_vm3, %v3163_v37  ;;  %v3165_v46 = vunpack.c.h.b16 %v3163_v37 }
  0xa7   :  { %v135_v38 = vpop.f32.mrf.mxu0 }
  0xa8   :  { %v136_v39 = vadd.f32 %v3318_v18, %v135_v38  ;;  %v271_v52 = vpack.c.b16 %v3165_v46, %v258_v49  ;;  %v462_v53 = vpack.c.b16 %v3165_v46, %v460_v50 }
  0xaa   :  { %v165_v41 = vmax.f32 %v136_v39, 0.0  ;;  %v279_v57 = vrot.slane %v271_v52, 1  ;;  %v465_v59 = vrot.slane %v462_v53, 2 }
  0xac   :  { %v197_v42 = vpack.c.bf16 %v165_v41, %v165_v41 }
  0xae   :  { %210 = vst.msk [vmem:[#allocation2 + $0xc] sm:$0xf] %vm175_vm2, %v197_v42 }
  0xaf   :  { %v138_v47 = vpop.f32.mrf.mxu0 }
  0xb0   :  { %v139_v48 = vadd.f32 %v3318_v18, %v138_v47 }
  0xb2   :  { %v166_v51 = vmax.f32 %v139_v48, 0.0 }
  0xb4   :  { %v198_v54 = vpack.c.bf16 %v166_v51, %v166_v51 }
  0xb5   :  { %v3067_v55 = vld [vmem:[#allocation2 + $0x8] sm:$0xff] }
  0xb6   :  { %211 = vst.msk [vmem:[#allocation2 + $0x10] sm:$0xf] %vm175_vm2, %v198_v54  ;;  %2511 = vmatmul.msk.bf16.gmra.mxu2 %vm304_vm3, %v3067_v55  ;;  %v280_v58 = vrot.slane %v3067_v55, 1  ;;  %v466_v60 = vrot.slane %v3067_v55, 2  ;;  %v976_v8 = vld [vmem:[#allocation2 + $0xc] sm:$0xc] }
  0xb7   :  { %v140_v56 = vpop.f32.mrf.mxu0  ;;  %v1007_v17 = vunpack.c.l.b16 %v976_v8  ;;  %v3170_v32 = vld [vmem:[#allocation2 + $0x8] sm:$0xff]  }
  0xb8   :  { %v141_v61 = vadd.f32 %v3318_v18, %v140_v56  ;;  %v281_v62 = vsel %vm278_vm4, %v279_v57, %v280_v58  ;;  %v467_v63 = vsel %vm464_vm5, %v465_v59, %v466_v60 }
  0xb9   :  { %2495 = vmatmul.msk.bf16.vlgmr.msra.gmra.mxu1 %vm304_vm3, %v281_v62  ;;  %2529 = vmatmul.msk.bf16.vlgmr.msra.gmra.mxu3 %vm304_vm3, %v467_v63 }
  0xba   :  { %v167_v0 = vmax.f32 %v141_v61, 0.0 }
  0xbc   :  { %v199_v1 = vpack.c.bf16 %v167_v0, %v167_v0 }
  0xbd   :  { %v3363_v6 = vld [vmem:[#allocation2 + $0x10] sm:$0xf] }
  0xbe   :  { %212 = vst.msk [vmem:[#allocation2 + $0x14] sm:$0xf] %vm175_vm2, %v199_v1  ;;  %v1008_v12 = vunpack.c.l.b16 %v3363_v6 }
  0xbf   :  { %v143_v2 = vpop.f32.mrf.mxu0 }
  0xc0   :  { %v144_v3 = vadd.f32 %v3318_v18, %v143_v2  ;;  %v1020_v20 = vpack.c.b16 %v1008_v12, %v1007_v17 }
  0xc2   :  { %v168_v4 = vmax.f32 %v144_v3, 0.0  ;;  %v1027_v24 = vrot.slane %v1020_v20, 2 }
  0xc4   :  { %v200_v5 = vpack.c.bf16 %v168_v4, %v168_v4 }
  0xc5   :  { %v3068_v7 = vld [vmem:[#allocation2 + $0x10] sm:$0xff] }
  0xc6   :  { %213 = vst.msk [vmem:[#allocation2 + $0x18] sm:$0xf] %vm175_vm2, %v200_v5  ;;  %2512 = vmatmul.msk.bf16.gmra.mxu2 %vm304_vm3, %v3068_v7  ;;  %v282_v10 = vrot.slane %v3068_v7, 1  ;;  %v468_v11 = vrot.slane %v3068_v7, 2  ;;  %v3111_v5 = vld [vmem:[%s3884_s2 + $0x88] sm:$0xff] }
  0xc7   :  { %v145_v9 = vpop.f32.mrf.mxu0  ;;  %1334 = vmatpush.bf16.msra.mxu2 %v3111_v5 }
  0xc8   :  { %v146_v13 = vadd.f32 %v3318_v18, %v145_v9  ;;  %v283_v14 = vsel %vm278_vm4, %v280_v58, %v282_v10  ;;  %v469_v16 = vsel %vm464_vm5, %v466_v60, %v468_v11 }
  0xc9   :  { %2496 = vmatmul.msk.bf16.gmra.mxu1 %vm304_vm3, %v283_v14  ;;  %2530 = vmatmul.msk.bf16.gmra.mxu3 %vm304_vm3, %v469_v16 }
  0xca   :  { %v169_v19 = vmax.f32 %v146_v13, 0.0 }
  0xcc   :  { %v201_v21 = vpack.c.bf16 %v169_v19, %v169_v19 }
  0xcd   :  { %v3375_v22 = vld [vmem:[#allocation2 + $0x14] sm:$0xff] }
  0xce   :  { %214 = vst.msk [vmem:[#allocation2 + $0x1c] sm:$0xf] %vm175_vm2, %v201_v21  ;;  %v1028_v25 = vrot.slane %v3375_v22, 2 }
  0xcf   :  { %v148_v23 = vpop.f32.mrf.mxu0 }
  0xd0   :  { %v149_v26 = vadd.f32 %v3318_v18, %v148_v23  ;;  %v1029_v27 = vsel %vm464_vm5, %v1027_v24, %v1028_v25 }
  0xd1   :  { %2669 = vmatmul.msk.bf16.vlgmr.msrb.gmra.mxu0 %vm304_vm3, %v1029_v27 }
  0xd2   :  { %v170_v28 = vmax.f32 %v149_v26, 0.0 }
  0xd4   :  { %v202_v29 = vpack.c.bf16 %v170_v28, %v170_v28  ;;  %v3441_v28 = vld [vmem:[#allocation2 + $0x34] sm:$0xff] }
  0xd5   :  { %v3069_v30 = vld [vmem:[#allocation2 + $0x18] sm:$0xff] }
  0xd6   :  { %215 = vst.msk [vmem:[#allocation2 + $0x20] sm:$0xf] %vm175_vm2, %v202_v29  ;;  %2513 = vmatmul.msk.bf16.gmra.mxu2 %vm304_vm3, %v3069_v30  ;;  %v284_v34 = vrot.slane %v3069_v30, 1  ;;  %v470_v35 = vrot.slane %v3069_v30, 2  ;;  %v3103_v29 = vld [vmem:[%s3884_s2 + $0x78] sm:$0xff]  ;;  %v1036_v30 = vrot.slane %v3441_v28, 2 }
  0xd7   :  { %v150_v33 = vpop.f32.mrf.mxu0  ;;  %1194 = vmatpush.bf16.msra.mxu1 %v3103_v29 }
  0xd8   :  { %v151_v36 = vadd.f32 %v3318_v18, %v150_v33  ;;  %v285_v15 = vsel %vm278_vm4, %v282_v10, %v284_v34  ;;  %v471_v37 = vsel %vm464_vm5, %v468_v11, %v470_v35  ;;  %v3078_v33 = vld [vmem:[#allocation2 + $0x4] sm:$0xf0] }
  0xd9   :  { %2497 = vmatmul.msk.bf16.gmra.mxu1 %vm304_vm3, %v285_v15  ;;  %2531 = vmatmul.msk.bf16.gmra.mxu3 %vm304_vm3, %v471_v37  ;;  %v2542_v15 = vld [vmem:[#allocation2 + $0x4] sm:$0x8]  ;;  %v3172_v37 = vld [vmem:[#allocation2 + $0x8] sm:$0xe] }
  0xda   :  { %v171_v38 = vmax.f32 %v151_v36, 0.0  ;;  %v3079_v36 = vld [vmem:[#allocation2 + $0xc] sm:$0xff] }
  0xdc   :  { %v203_v39 = vpack.c.bf16 %v171_v38, %v171_v38  ;;  %v2543_v38 = vor.u32 %v3078_v33, %v2542_v15 }
  0xdd   :  { %v3397_v40 = vld [vmem:[#allocation2 + $0x1c] sm:$0xff] }
  0xde   :  { %216 = vst.msk [vmem:[#allocation2 + $0x24] sm:$0xf] %vm175_vm2, %v203_v39  ;;  %v1030_v42 = vrot.slane %v3397_v40, 2 }
  0xdf   :  { %v153_v41 = vpop.f32.mrf.mxu0 }
  0xe0   :  { %v154_v43 = vadd.f32 %v3318_v18, %v153_v41  ;;  %v1031_v44 = vsel %vm464_vm5, %v1028_v25, %v1030_v42  ;;  %v3093_v25 = vld [vmem:[%s3884_s2 + $0x50] sm:$0xff] }
  0xe1   :  { %2670 = vmatmul.msk.bf16.gmra.mxu0 %vm304_vm3, %v1031_v44 }
  0xe2   :  { %v172_v45 = vmax.f32 %v154_v43, 0.0  ;;  %v619_v43 = vrot.slane %v2543_v38, 3 }
  0xe4   :  { %v204_v46 = vpack.c.bf16 %v172_v45, %v172_v45 }
  0xe5   :  { %v3070_v47 = vld [vmem:[#allocation2 + $0x20] sm:$0xff] }
  0xe6   :  { %217 = vst.msk [vmem:[#allocation2 + $0x28] sm:$0xf] %vm175_vm2, %v204_v46  ;;  %2514 = vmatmul.msk.bf16.gmra.mxu2 %vm304_vm3, %v3070_v47  ;;  %v286_v49 = vrot.slane %v3070_v47, 1  ;;  %v472_v50 = vrot.slane %v3070_v47, 2 }
  0xe7   :  { %v155_v48 = vpop.f32.mrf.mxu0 }
  0xe8   :  { %v156_v51 = vadd.f32 %v3318_v18, %v155_v48  ;;  %v287_v52 = vsel %vm278_vm4, %v284_v34, %v286_v49  ;;  %v473_v53 = vsel %vm464_vm5, %v470_v35, %v472_v50  ;;  %v3171_v34 = vld [vmem:[#allocation2 + $0x8] sm:$0xf0]  ;;  %v3086_v35 = vld [vmem:[#allocation2 + $0x10] sm:$0xff] }
  0xe9   :  { %2498 = vmatmul.msk.bf16.gmra.mxu1 %vm304_vm3, %v287_v52  ;;  %2532 = vmatmul.msk.bf16.gmra.mxu3 %vm304_vm3, %v473_v53  ;;  %v3173_v39 = vor.u32 %v3172_v37, %v3171_v34  ;;  %v875_v41 = vrot.slane %v3086_v35, 1 }
  0xea   :  { %v173_v54 = vmax.f32 %v156_v51, 0.0 }
  0xeb   :  { %v874_v44 = vrot.slane %v3173_v39, 1 }
  0xec   :  { %v205_v55 = vpack.c.bf16 %v173_v54, %v173_v54 }
  0xed   :  { %v3411_v56 = vld [vmem:[#allocation2 + $0x24] sm:$0xff]  ;;  %v876_v47 = vsel %vm278_vm4, %v874_v44, %v875_v41 }
  0xee   :  { %218 = vst.msk [vmem:[#allocation2 + $0x2c] sm:$0xf] %vm175_vm2, %v205_v55  ;;  %v1032_v58 = vrot.slane %v3411_v56, 2 }
  0xef   :  { %v158_v57 = vpop.f32.mrf.mxu0 }
  0xf0   :  { %v159_v59 = vadd.f32 %v3318_v18, %v158_v57  ;;  %v1033_v60 = vsel %vm464_vm5, %v1030_v42, %v1032_v58  ;;  %v3094_v18 = vld [vmem:[%s3884_s2 + $0x58] sm:$0xff]  ;;  %v620_v42 = vrot.slane %v3079_v36, 3 }
  0xf1   :  { %2671 = vmatmul.msk.bf16.gmra.mxu0 %vm304_vm3, %v1033_v60  ;;  %926 = vmatpush.bf16.msrb.mxu3 %v3094_v18  ;;  %v988_v36 = vld [vmem:[#allocation2 + $0x3c] sm:$0x7] }
  0xf2   :  { %v174_v61 = vmax.f32 %v159_v59, 0.0  ;;  %v621_v46 = vsel %vm618_vm7, %v619_v43, %v620_v42  ;;  %v1019_v15 = vunpack.c.l.b16 %v988_v36 }
  0xf4   :  { %v206_v62 = vpack.c.bf16 %v174_v61, %v174_v61  ;;  %v3110_v61 = vld [vmem:[%s3884_s2 + $0x80] sm:$0xff]  ;;  %v1026_v39 = vpack.c.b16 %v1019_v15, %v1019_v15 }
  0xf5   :  { %v3071_v63 = vld [vmem:[#allocation2 + $0x28] sm:$0xff]  ;;  %927 = vmatpush.bf16.msrb.mxu3 %v3093_v25  ;;  %1335 = vmatpush.bf16.msra.mxu2 %v3110_v61 }
  0xf6   :  { %219 = vst.msk [vmem:[#allocation2 + $0x30] sm:$0x1] %vm192_vm6, %v206_v62  ;;  %2515 = vmatmul.msk.bf16.gmra.mxu2 %vm304_vm3, %v3071_v63  ;;  %v288_v1 = vrot.slane %v3071_v63, 1  ;;  %v474_v2 = vrot.slane %v3071_v63, 2  ;;  %v1038_v43 = vrot.slane %v1026_v39, 2 }
  0xf7   :  { %v160_v0 = vpop.f32.mrf.mxu0 }
  0xf8   :  { %v289_v3 = vsel %vm278_vm4, %v286_v49, %v288_v1  ;;  %v475_v4 = vsel %vm464_vm5, %v472_v50, %v474_v2  ;;  %v3087_v49 = vld [vmem:[#allocation2 + $0x18] sm:$0xff]  ;;  %v3088_v0 = vld [vmem:[#allocation2 + $0x20] sm:$0xff] }
  0xf9   :  { %2499 = vmatmul.msk.bf16.gmra.mxu1 %vm304_vm3, %v289_v3  ;;  %2533 = vmatmul.msk.bf16.gmra.mxu3 %vm304_vm3, %v475_v4  ;;  %v3080_v50 = vld [vmem:[#allocation2 + $0x14] sm:$0xff]  ;;  %v877_v51 = vrot.slane %v3087_v49, 1  ;;  %v879_v18 = vrot.slane %v3088_v0, 1 }
  0xfa   :  { %v622_v52 = vrot.slane %v3080_v50, 3  ;;  %v3102_v3 = vld [vmem:[%s3884_s2 + $0x70] sm:$0xff] }
  0xfb   :  { %v878_v57 = vsel %vm278_vm4, %v875_v41, %v877_v51  ;;  %1195 = vmatpush.bf16.msra.mxu1 %v3102_v3 }
  0xfc   :  { %v623_v55 = vsel %vm618_vm7, %v620_v42, %v622_v52 }
  0xfd   :  { %v3430_v7 = vld [vmem:[#allocation2 + $0x2c] sm:$0xff] }
  0xfe   :  { %v233_v8 = vld [vmem:[#allocation2 + $0x30] sm:$0x1]  ;;  %v1034_v13 = vrot.slane %v3430_v7, 2 }
  0xff   :  { %v239_v9 = vld [vmem:[#allocation2 + $0x30] sm:$0x3]  ;;  %v372_v14 = vunpack.c.l.b16 %v233_v8 }
 0x100   :  { %v270_v10 = vunpack.c.l.b16 %v239_v9  ;;  %v452_v11 = vld [vmem:[#allocation2 + $0x30] sm:$0x7]  ;;  %v1035_v17 = vsel %vm464_vm5, %v1032_v58, %v1034_v13  ;;  %v1037_v31 = vsel %vm464_vm5, %v1034_v13, %v1036_v30  ;;  %v880_v13 = vsel %vm278_vm4, %v877_v51, %v879_v18 }
 0x101   :  { %v461_v16 = vunpack.c.l.b16 %v452_v11  ;;  %2672 = vmatmul.msk.bf16.gmra.mxu0 %vm304_vm3, %v1035_v17  ;;  %v374_v21 = vpack.c.b16 %v372_v14, %v372_v14  ;;  %v3090_v44 = vld [vmem:[#allocation2 + $0x30] sm:$0xff] }
 0x102   :  { %v277_v19 = vpack.c.b16 %v270_v10, %v270_v10  ;;  %v883_v50 = vrot.slane %v3090_v44, 1 }
 0x103   :  { %v463_v20 = vpack.c.b16 %v461_v16, %v461_v16 }
 0x104   :  { %v290_v23 = vrot.slane %v277_v19, 1 }
 0x105   :  { %v476_v24 = vrot.slane %v463_v20, 2 }
 0x106   :  { %2516 = vmatmul.msk.bf16.gmra.mxu2 %vm304_vm3, %v374_v21  ;;  %v291_v26 = vsel %vm278_vm4, %v288_v1, %v290_v23  ;;  %v3081_v1 = vld [vmem:[#allocation2 + $0x1c] sm:$0xff]  ;;  %v3089_v21 = vld [vmem:[#allocation2 + $0x28] sm:$0xff] }
 0x107   :  { %v477_v27 = vsel %vm464_vm5, %v474_v2, %v476_v24  ;;  %v624_v5 = vrot.slane %v3081_v1, 3 }
 0x109   :  { %2500 = vmatmul.msk.bf16.gmra.mxu1 %vm304_vm3, %v291_v26  ;;  %2534 = vmatmul.msk.bf16.gmra.mxu3 %vm304_vm3, %v477_v27  ;;  %v625_v11 = vsel %vm618_vm7, %v622_v52, %v624_v5  ;;  %v881_v26 = vrot.slane %v3089_v21, 1 }
 0x10b   :  { %v882_v34 = vsel %vm278_vm4, %v879_v18, %v881_v26 }
 0x111   :  { %2673 = vmatmul.msk.bf16.gmra.mxu0 %vm304_vm3, %v1037_v31 }
 0x116   :  { %2611 = vmatmul.msk.bf16.vlgmr.msrb.gmra.mxu2 %vm304_vm3, %v3170_v32 }
 0x119   :  { %2501 = vmatmul.msk.bf16.gmra.mxu1 %vm304_vm3, %v290_v23  ;;  %2535 = vmatmul.msk.bf16.gmra.mxu3 %vm304_vm3, %v476_v24  ;;  %v3082_v23 = vld [vmem:[#allocation2 + $0x24] sm:$0xff] }
 0x11a   :  { %v626_v27 = vrot.slane %v3082_v23, 3 }
 0x11c   :  { %v627_v33 = vsel %vm618_vm7, %v624_v5, %v626_v27 }
 0x126   :  { %2612 = vmatmul.msk.bf16.gmra.mxu2 %vm304_vm3, %v3086_v35 }
 0x129   :  { %v417_v45 = vpop.f32.mrf.mxu2  ;;  %2572 = vmatmul.msk.bf16.vlgmr.msrb.gmra.mxu1 %vm304_vm3, %v621_v46  ;;  %2630 = vmatmul.msk.bf16.vlgmr.msrb.gmra.mxu3 %vm304_vm3, %v876_v47  ;;  %v1039_v47 = vsel %vm464_vm5, %v1036_v30, %v1038_v43  ;;  %v579_v30 = vld [vmem:[#allocation2 + $0x34] sm:$0xf] }
 0x12a   :  { %2674 = vmatmul.msk.bf16.gmra.mxu0 %vm304_vm3, %v1039_v47  ;;  %v610_v61 = vunpack.c.l.b16 %v579_v30 }
 0x12c   :  { %v617_v3 = vpack.c.b16 %v610_v61, %v610_v61 }
 0x131   :  { %v419_v48 = vpop.f32.mrf.mxu2 }
 0x136   :  { %v335_v53 = vpop.f32.mrf.mxu1  ;;  %2613 = vmatmul.msk.bf16.gmra.mxu2 %vm304_vm3, %v3087_v49 }
 0x137   :  { %v418_v54 = vadd.f32 %v417_v45, %v335_v53  ;;  %v3083_v45 = vld [vmem:[#allocation2 + $0x2c] sm:$0xff] }
 0x138   :  { %v628_v49 = vrot.slane %v3083_v45, 3 }
 0x139   :  { %v422_v58 = vpop.f32.mrf.mxu2  ;;  %2573 = vmatmul.msk.bf16.gmra.mxu1 %vm304_vm3, %v623_v55  ;;  %2631 = vmatmul.msk.bf16.gmra.mxu3 %vm304_vm3, %v878_v57  ;;  %v862_v57 = vld [vmem:[#allocation2 + $0x38] sm:$0x3] }
 0x13a   :  { %v629_v53 = vsel %vm618_vm7, %v626_v27, %v628_v49  ;;  %2675 = vmatmul.msk.bf16.gmra.mxu0 %vm304_vm3, %v1038_v43 }
 0x13c   :  { %v520_v59 = vpop.f32.mrf.mxu3 }
 0x13d   :  { %v3466_v60 = vadd.f32 %v520_v59, %v418_v54  ;;  %v884_v54 = vsel %vm278_vm4, %v881_v26, %v883_v50 }
 0x13e   :  { %v337_v62 = vpop.f32.mrf.mxu1 }
 0x13f   :  { %v420_v63 = vadd.f32 %v419_v48, %v337_v62  ;;  %v871_v62 = vunpack.c.l.b16 %v862_v57 }
 0x141   :  { %v424_v2 = vpop.f32.mrf.mxu2 }
 0x144   :  { %v522_v4 = vpop.f32.mrf.mxu3 }
 0x145   :  { %v3474_v8 = vadd.f32 %v522_v4, %v420_v63  ;;  %v873_v4 = vpack.c.b16 %v871_v62, %v871_v62  ;;  %v3106_v62 = vld [vmem:[#allocation2 + $0x20] sm:$0xff] }
 0x146   :  { %v340_v9 = vpop.f32.mrf.mxu1  ;;  %2614 = vmatmul.msk.bf16.gmra.mxu2 %vm304_vm3, %v3088_v0 }
 0x147   :  { %v423_v10 = vadd.f32 %v422_v58, %v340_v9  ;;  %v733_v58 = vld [vmem:[#allocation2 + $0x38] sm:$0x1] }
 0x148   :  { %v764_v1 = vunpack.c.l.b16 %v733_v58 }
 0x149   :  { %v427_v14 = vpop.f32.mrf.mxu2  ;;  %2574 = vmatmul.msk.bf16.gmra.mxu1 %vm304_vm3, %v625_v11  ;;  %2632 = vmatmul.msk.bf16.gmra.mxu3 %vm304_vm3, %v880_v13  ;;  %v885_v11 = vrot.slane %v873_v4, 1 }
 0x14a   :  { %v771_v5 = vpack.c.b16 %v764_v1, %v764_v1 }
 0x14c   :  { %v525_v16 = vpop.f32.mrf.mxu3 }
 0x14d   :  { %v3481_v17 = vadd.f32 %v525_v16, %v423_v10  ;;  %v630_v10 = vrot.slane %v617_v3, 3 }
 0x14e   :  { %v342_v19 = vpop.f32.mrf.mxu1  ;;  %v3517_v23 = vpop.f32.mrf.mxu0 }
 0x14f   :  { %v425_v20 = vadd.f32 %v424_v2, %v342_v19  ;;  %v631_v16 = vsel %vm618_vm7, %v628_v49, %v630_v10  ;;  %v886_v19 = vsel %vm278_vm4, %v883_v50, %v885_v11  ;;  %v1143_v49 = vrot.slane %v3375_v22, 3  ;;  %v3115_v22 = vld [vmem:[%s3885_s3 + $0x18] sm:$0xff] }
 0x150   :  { %1473 = vmatpush.bf16.msra.mxu3 %v3115_v22 }
 0x151   :  { %v429_v24 = vpop.f32.mrf.mxu2 }
 0x154   :  { %v527_v25 = vpop.f32.mrf.mxu3 }
 0x155   :  { %v3483_v29 = vadd.f32 %v527_v25, %v425_v20 }
 0x156   :  { %v345_v31 = vpop.f32.mrf.mxu1  ;;  %2615 = vmatmul.msk.bf16.gmra.mxu2 %vm304_vm3, %v3089_v21 }
 0x157   :  { %v428_v32 = vadd.f32 %v427_v14, %v345_v31 }
 0x159   :  { %v432_v35 = vpop.f32.mrf.mxu2  ;;  %2575 = vmatmul.msk.bf16.gmra.mxu1 %vm304_vm3, %v627_v33  ;;  %2633 = vmatmul.msk.bf16.gmra.mxu3 %vm304_vm3, %v882_v34  ;;  %v3526_v34 = vpop.f32.mrf.mxu0 }
 0x15c   :  { %v530_v37 = vpop.f32.mrf.mxu3 }
 0x15d   :  { %v3490_v38 = vadd.f32 %v530_v37, %v428_v32  ;;  %v3104_v32 = vld [vmem:[#allocation2 + $0x10] sm:$0xff]  ;;  %v1129_v37 = vld [vmem:[#allocation2 + $0xc] sm:$0x8] }
 0x15e   :  { %v347_v41 = vpop.f32.mrf.mxu1 }
 0x15f   :  { %v3492_v42 = vadd.f32 %v429_v24, %v347_v41 }
 0x161   :  { %v434_v46 = vpop.f32.mrf.mxu2  ;;  %v3534_v45 = vpop.f32.mrf.mxu0 }
 0x164   :  { %v3498_v48 = vpop.f32.mrf.mxu3 }
 0x166   :  { %v350_v51 = vpop.f32.mrf.mxu1  ;;  %2616 = vmatmul.msk.bf16.gmra.mxu2 %vm304_vm3, %v3090_v44  ;;  %v1138_v44 = vunpack.c.l.b16 %v1129_v37 }
 0x167   :  { %v433_v52 = vadd.f32 %v432_v35, %v350_v51  ;;  %v3105_v51 = vld [vmem:[#allocation2 + $0x18] sm:$0xff] }
 0x168   :  { %v1140_v47 = vpack.c.b16 %v1008_v12, %v1138_v44 }
 0x169   :  { %v437_v55 = vpop.f32.mrf.mxu2  ;;  %2576 = vmatmul.msk.bf16.gmra.mxu1 %vm304_vm3, %v629_v53  ;;  %2634 = vmatmul.msk.bf16.gmra.mxu3 %vm304_vm3, %v884_v54  ;;  %v3544_v57 = vpop.f32.mrf.mxu0 }
 0x16a   :  { %v1142_v53 = vrot.slane %v1140_v47, 3 }
 0x16c   :  { %v535_v59 = vpop.f32.mrf.mxu3 }
 0x16d   :  { %v3505_v63 = vadd.f32 %v535_v59, %v433_v52 }
 0x16e   :  { %v352_v0 = vpop.f32.mrf.mxu1 }
 0x16f   :  { %v3507_v2 = vadd.f32 %v434_v46, %v352_v0  ;;  %v1145_v0 = vrot.slane %v3397_v40, 3 }
 0x171   :  { %v439_v18 = vpop.f32.mrf.mxu2  ;;  %v3552_v1 = vpop.f32.mrf.mxu0 }
 0x174   :  { %v3510_v9 = vpop.f32.mrf.mxu3 }
 0x176   :  { %v355_v13 = vpop.f32.mrf.mxu1  ;;  %2617 = vmatmul.msk.bf16.gmra.mxu2 %vm304_vm3, %v771_v5 }
 0x177   :  { %v438_v14 = vadd.f32 %v437_v55, %v355_v13  ;;  %v1144_v55 = vsel %vm618_vm7, %v1142_v53, %v1143_v49 }
 0x179   :  { %v442_v20 = vpop.f32.mrf.mxu2  ;;  %2577 = vmatmul.msk.bf16.gmra.mxu1 %vm304_vm3, %v631_v16  ;;  %2635 = vmatmul.msk.bf16.gmra.mxu3 %vm304_vm3, %v886_v19  ;;  %v3560_v16 = vpop.f32.mrf.mxu0 }
 0x17c   :  { %v540_v21 = vpop.f32.mrf.mxu3 }
 0x17d   :  { %v3519_v24 = vadd.f32 %v540_v21, %v438_v14 }
 0x17e   :  { %v357_v25 = vpop.f32.mrf.mxu1 }
 0x17f   :  { %v3521_v26 = vadd.f32 %v439_v18, %v357_v25  ;;  %v1146_v18 = vsel %vm618_vm7, %v1143_v49, %v1145_v0  ;;  %v1147_v25 = vrot.slane %v3411_v56, 3 }
 0x181   :  { %v444_v27 = vpop.f32.mrf.mxu2 }
 0x184   :  { %v3523_v31 = vpop.f32.mrf.mxu3 }
 0x186   :  { %v360_v33 = vpop.f32.mrf.mxu1  ;;  %2731 = vmatmul.msk.bf16.vlgmr.msra.gmra.mxu2 %vm304_vm3, %v3104_v32 }
 0x187   :  { %v443_v35 = vadd.f32 %v442_v20, %v360_v33 }
 0x189   :  { %v447_v36 = vpop.f32.mrf.mxu2  ;;  %2578 = vmatmul.msk.bf16.gmra.mxu1 %vm304_vm3, %v630_v10  ;;  %2636 = vmatmul.msk.bf16.gmra.mxu3 %vm304_vm3, %v885_v11 }
 0x18c   :  { %v545_v15 = vpop.f32.mrf.mxu3 }
 0x18d   :  { %v3530_v39 = vadd.f32 %v545_v15, %v443_v35  ;;  %v3574_v35 = vpop.f32.mrf.mxu0 }
 0x18e   :  { %v362_v41 = vpop.f32.mrf.mxu1 }
 0x18f   :  { %v3532_v43 = vadd.f32 %v444_v27, %v362_v41  ;;  %v3119_v27 = vld [vmem:[%s3885_s3 + $0x38] sm:$0xff] }
 0x190   :  { %1517 = vmatpush.bf16.msra.mxu0 %v3119_v27 }
 0x191   :  { %v449_v46 = vpop.f32.mrf.mxu2 }
 0x194   :  { %v3539_v50 = vpop.f32.mrf.mxu3 }
 0x196   :  { %v365_v52 = vpop.f32.mrf.mxu1  ;;  %2732 = vmatmul.msk.bf16.gmra.mxu2 %vm304_vm3, %v3105_v51  ;;  %v3108_v51 = vld [vmem:[#allocation2 + $0x30] sm:$0xff] }
 0x197   :  { %v448_v54 = vadd.f32 %v447_v36, %v365_v52  ;;  %v1149_v52 = vrot.slane %v3430_v7, 3  ;;  %v3109_v7 = vld [vmem:[#allocation2 + $0x38] sm:$0xff] }
 0x199   :  { %v814_v30 = vpop.f32.mrf.mxu2  ;;  %2688 = vmatmul.msk.bf16.vlgmr.msra.gmra.mxu1 %vm304_vm3, %v1144_v55  ;;  %v1150_v55 = vsel %vm618_vm7, %v1147_v25, %v1149_v52 }
 0x19c   :  { %v550_v58 = vpop.f32.mrf.mxu3 }
 0x19d   :  { %v3546_v6 = vadd.f32 %v550_v58, %v448_v54 }
 0x19e   :  { %v367_v12 = vpop.f32.mrf.mxu1 }
 0x1a1   :  { %v816_v59 = vpop.f32.mrf.mxu2 }
 0x1a4   :  { %v552_v61 = vpop.f32.mrf.mxu3 }
 0x1a6   :  { %v674_v3 = vpop.f32.mrf.mxu1  ;;  %2733 = vmatmul.msk.bf16.gmra.mxu2 %vm304_vm3, %v3106_v62 }
 0x1a7   :  { %v708_v4 = vadd.f32 %v674_v3, %v3466_v60  ;;  %v3107_v60 = vld [vmem:[#allocation2 + $0x28] sm:$0xff] }
 0x1a9   :  { %v819_v5 = vpop.f32.mrf.mxu2  ;;  %2689 = vmatmul.msk.bf16.gmra.mxu1 %vm304_vm3, %v1146_v18  ;;  %v848_v10 = vadd.f32 %v814_v30, %v708_v4  ;;  %v1130_v18 = vld [vmem:[#allocation2 + $0x3c] sm:$0xf] }
 0x1ac   :  { %v929_v11 = vpop.f32.mrf.mxu3 }
 0x1ad   :  { %v3558_v13 = vadd.f32 %v929_v11, %v848_v10 }
 0x1ae   :  { %v676_v14 = vpop.f32.mrf.mxu1 }
 0x1af   :  { %v709_v40 = vadd.f32 %v676_v14, %v3474_v8  ;;  %v1148_v8 = vsel %vm618_vm7, %v1145_v0, %v1147_v25 }
 0x1b1   :  { %v821_v19 = vpop.f32.mrf.mxu2  ;;  %v3563_v20 = vadd.f32 %v816_v59, %v709_v40  ;;  %v1139_v40 = vunpack.c.l.b16 %v1130_v18 }
 0x1b4   :  { %v3565_v21 = vpop.f32.mrf.mxu3 }
 0x1b6   :  { %v679_v32 = vpop.f32.mrf.mxu1  ;;  %2734 = vmatmul.msk.bf16.gmra.mxu2 %vm304_vm3, %v3107_v60 }
 0x1b7   :  { %v710_v33 = vadd.f32 %v679_v32, %v3481_v17  ;;  %v3584_v17 = vpop.f32.mrf.mxu0 }
 0x1b9   :  { %v824_v36 = vpop.f32.mrf.mxu2  ;;  %2690 = vmatmul.msk.bf16.gmra.mxu1 %vm304_vm3, %v1148_v8  ;;  %v850_v15 = vadd.f32 %v819_v5, %v710_v33  ;;  %v3114_v5 = vld [vmem:[%s3885_s3 + $0x10] sm:$0xff] }
 0x1ba   :  { %1474 = vmatpush.bf16.msra.mxu3 %v3114_v5 }
 0x1bc   :  { %v934_v37 = vpop.f32.mrf.mxu3 }
 0x1bd   :  { %v3577_v56 = vadd.f32 %v934_v37, %v850_v15 }
 0x1be   :  { %v681_v41 = vpop.f32.mrf.mxu1 }
 0x1bf   :  { %v711_v44 = vadd.f32 %v681_v41, %v3483_v29  ;;  %v3593_v12 = vpop.f32.mrf.mxu0 }
 0x1c1   :  { %v3580_v46 = vpop.f32.mrf.mxu2  ;;  %v3582_v47 = vadd.f32 %v821_v19, %v711_v44 }
 0x1c4   :  { %v3586_v49 = vpop.f32.mrf.mxu3 }
 0x1c6   :  { %v684_v53 = vpop.f32.mrf.mxu1  ;;  %2735 = vmatmul.msk.bf16.gmra.mxu2 %vm304_vm3, %v3108_v51 }
 0x1c7   :  { %v712_v54 = vadd.f32 %v684_v53, %v3490_v38  ;;  %v1151_v38 = vrot.slane %v3441_v28, 3  ;;  %v1104_v3 = vpop.f32.mrf.mxu0  ;;  %v1256_v28 = vld [vmem:[#allocation2 + $0x40] sm:$0x1] }
 0x1c8   :  { %v1287_v27 = vunpack.c.l.b16 %v1256_v28  ;;  %v565_v28 = vadd.f32 %v3539_v50, %v3532_v43  ;;  %v3121_v50 = vld [vmem:[%s3885_s3 + $0x48] sm:$0xff] }
 0x1c9   :  { %v829_v30 = vpop.f32.mrf.mxu2  ;;  %2691 = vmatmul.msk.bf16.gmra.mxu1 %vm304_vm3, %v1150_v55  ;;  %v852_v29 = vadd.f32 %v824_v36, %v712_v54  ;;  %v1152_v10 = vsel %vm618_vm7, %v1149_v52, %v1151_v38  ;;  %v563_v55 = vadd.f32 %v3523_v31, %v3521_v26  ;;  %2079 = vmatpush.bf16.msrb.mxu2 %v3121_v50 }
 0x1ca   :  { %v1294_v36 = vpack.c.b16 %v1287_v27, %v1287_v27  ;;  %v966_v50 = vadd.f32 %v3586_v49, %v3582_v47  ;;  %v3131_v47 = vld [vmem:[%s3885_s3 + $0x98] sm:$0xff] }
 0x1cc   :  { %v939_v58 = vpop.f32.mrf.mxu3 }
 0x1cd   :  { %v3595_v22 = vadd.f32 %v939_v58, %v852_v29  ;;  %v3118_v29 = vld [vmem:[%s3885_s3 + $0x30] sm:$0xff] }
 0x1ce   :  { %v3597_v59 = vpop.f32.mrf.mxu1  ;;  %1518 = vmatpush.bf16.msra.mxu0 %v3118_v29 }
 0x1cf   :  { %v1107_v32 = vpop.f32.mrf.mxu0 }
 0x1d1   :  { %v3599_v61 = vpop.f32.mrf.mxu2 }
 0x1d4   :  { %v3601_v62 = vpop.f32.mrf.mxu3 }
 0x1d6   :  { %v689_v0 = vpop.f32.mrf.mxu1  ;;  %2736 = vmatmul.msk.bf16.gmra.mxu2 %vm304_vm3, %v3109_v7 }
 0x1d7   :  { %v714_v4 = vadd.f32 %v689_v0, %v3505_v63  ;;  %v1141_v63 = vpack.c.b16 %v1139_v40, %v1139_v40  ;;  %v1109_v51 = vpop.f32.mrf.mxu0 }
 0x1d9   :  { %v834_v11 = vpop.f32.mrf.mxu2  ;;  %2692 = vmatmul.msk.bf16.gmra.mxu1 %vm304_vm3, %v1152_v10  ;;  %v854_v14 = vadd.f32 %v829_v30, %v714_v4  ;;  %v1153_v8 = vrot.slane %v1141_v63, 3 }
 0x1db   :  { %v1154_v41 = vsel %vm618_vm7, %v1151_v38, %v1153_v8 }
 0x1dc   :  { %v944_v19 = vpop.f32.mrf.mxu3 }
 0x1dd   :  { %v3611_v60 = vadd.f32 %v944_v19, %v854_v14 }
 0x1de   :  { %v3613_v25 = vpop.f32.mrf.mxu1 }
 0x1df   :  { %v1112_v38 = vpop.f32.mrf.mxu0 }
 0x1e1   :  { %v836_v33 = vpop.f32.mrf.mxu2 }
 0x1e4   :  { %v3615_v15 = vpop.f32.mrf.mxu3 }
 0x1e6   :  { %v694_v37 = vpop.f32.mrf.mxu1  ;;  %2737 = vmatmul.msk.bf16.gmra.mxu2 %vm304_vm3, %v1294_v36 }
 0x1e7   :  { %v716_v44 = vadd.f32 %v694_v37, %v3519_v24  ;;  %v1114_v26 = vpop.f32.mrf.mxu0 }
 0x1e9   :  { %v839_v52 = vpop.f32.mrf.mxu2  ;;  %2693 = vmatmul.msk.bf16.gmra.mxu1 %vm304_vm3, %v1154_v41  ;;  %v856_v53 = vadd.f32 %v834_v11, %v716_v44 }
 0x1ec   :  { %v949_v54 = vpop.f32.mrf.mxu3 }
 0x1ed   :  { %v3623_v30 = vadd.f32 %v949_v54, %v856_v53  ;;  %v3116_v54 = vld [vmem:[%s3885_s3 + $0x20] sm:$0xff] }
 0x1ee   :  { %v696_v58 = vpop.f32.mrf.mxu1 }
 0x1ef   :  { %v717_v7 = vadd.f32 %v696_v58, %v563_v55  ;;  %v3120_v55 = vld [vmem:[%s3885_s3 + $0x40] sm:$0xff] }
 0x1f0   :  { %2080 = vmatpush.bf16.msrb.mxu2 %v3120_v55 }
 0x1f1   :  { %v841_v24 = vpop.f32.mrf.mxu2  ;;  %v857_v0 = vadd.f32 %v836_v33, %v717_v7 }
 0x1f4   :  { %v951_v4 = vpop.f32.mrf.mxu3 }
 0x1f5   :  { %v972_v18 = vadd.f32 %v951_v4, %v857_v0 }
 0x1f6   :  { %v699_v5 = vpop.f32.mrf.mxu1 }
 0x1f7   :  { %v718_v10 = vadd.f32 %v699_v5, %v3530_v39  ;;  %v3629_v11 = vadd.f32 %v1104_v3, %v972_v18  ;;  %v3658_v18 = vld [vmem:[%s3886_s4 + $0x1] ss:$0 sm:$0xff]  ;;  %v3123_v5 = vld [vmem:[%s3885_s3 + $0x58] sm:$0xff] }
 0x1f8   :  { %1561 = vmatpush.bf16.msrb.mxu3 %v3123_v5  ;;  %v1119_v5 = vadd.f32 %v3544_v57, %v966_v50 }
 0x1f9   :  { %v844_v31 = vpop.f32.mrf.mxu2  ;;  %2694 = vmatmul.msk.bf16.gmra.mxu1 %vm304_vm3, %v1153_v8  ;;  %v858_v14 = vadd.f32 %v839_v52, %v718_v10  ;;  %v3117_v8 = vld [vmem:[%s3885_s3 + $0x28] sm:$0xff]  ;;  %v964_v10 = vadd.f32 %v3565_v21, %v3563_v20 }
 0x1fa   :  { %2051 = vmatpush.bf16.msrb.mxu1 %v3117_v8  ;;  %v3136_v8 = vld [vmem:[%s3885_s3 + $0xc0] sm:$0xff] }
 0x1fc   :  { %v954_v40 = vpop.f32.mrf.mxu3 }
 0x1fd   :  { %v973_v19 = vadd.f32 %v954_v40, %v858_v14  ;;  %v3126_v14 = vld [vmem:[%s3885_s3 + $0x70] sm:$0xff] }
 0x1fe   :  { %v701_v63 = vpop.f32.mrf.mxu1  ;;  %2052 = vmatpush.bf16.msrb.mxu1 %v3116_v54 }
 0x1ff   :  { %v719_v27 = vadd.f32 %v701_v63, %v565_v28  ;;  %v3634_v33 = vadd.f32 %v1107_v32, %v973_v19  ;;  %v1117_v28 = vadd.f32 %v3526_v34, %v964_v10  ;;  %v3133_v63 = vld [vmem:[%s3885_s3 + $0xa8] sm:$0xff] }
 0x201   :  { %v846_v36 = vpop.f32.mrf.mxu2  ;;  %v859_v37 = vadd.f32 %v841_v24, %v719_v27  ;;  %v1116_v24 = vadd.f32 %v3517_v23, %v3558_v13 }
 0x202   :  { %2171 = vmatpush.bf16.msra.mxu1 %v3133_v63 }
 0x204   :  { %v956_v41 = vpop.f32.mrf.mxu3 }
 0x205   :  { %v974_v39 = vadd.f32 %v956_v41, %v859_v37  ;;  %v3137_v37 = vld [vmem:[%s3885_s3 + $0xc8] sm:$0xff]  ;;  %v3132_v41 = vld [vmem:[%s3885_s3 + $0xa0] sm:$0xff] }
 0x206   :  { %v704_v3 = vpop.f32.mrf.mxu1  ;;  %2199 = vmatpush.bf16.msra.mxu2 %v3137_v37  ;;  %2172 = vmatpush.bf16.msra.mxu1 %v3132_v41 }
 0x207   :  { %v720_v44 = vadd.f32 %v704_v3, %v3546_v6  ;;  %v3637_v53 = vadd.f32 %v1109_v51, %v974_v39  ;;  %v1118_v3 = vadd.f32 %v3534_v45, %v3577_v56 }
 0x209   :  { %v1337_v52 = vpop.f32.mrf.mxu2  ;;  %v860_v43 = vadd.f32 %v844_v31, %v720_v44  ;;  %v3122_v31 = vld [vmem:[%s3885_s3 + $0x50] sm:$0xff] }
 0x20a   :  { %1562 = vmatpush.bf16.msrb.mxu3 %v3122_v31  ;;  %2200 = vmatpush.bf16.msra.mxu2 %v3136_v8 }
 0x20c   :  { %v959_v32 = vpop.f32.mrf.mxu3 }
 0x20d   :  { %v975_v6 = vadd.f32 %v959_v32, %v860_v43 }
 0x20e   :  { %v706_v51 = vpop.f32.mrf.mxu1 }
 0x20f   :  { %v3651_v29 = vadd.f32 %v1112_v38, %v975_v6  ;;  %v3127_v38 = vld [vmem:[%s3885_s3 + $0x78] sm:$0xff] }
 0x210   :  { %1605 = vmatpush.bf16.msrb.mxu0 %v3127_v38 }
 0x211   :  { %v1339_v58 = vpop.f32.mrf.mxu2 }
 0x214   :  { %v961_v7 = vpop.f32.mrf.mxu3  ;;  %1606 = vmatpush.bf16.msrb.mxu0 %v3126_v14 }
 0x216   :  { %v1197_v0 = vpop.f32.mrf.mxu1 }
 0x217   :  { %v1231_v4 = vadd.f32 %v1197_v0, %v1116_v24 }
 0x219   :  { %v1371_v26 = vadd.f32 %v1337_v52, %v1231_v4  ;;  %v1342_v23 = vpop.f32.mrf.mxu2 }
 0x21b   :  { %v1385_v13 = vadd.f32 %v3658_v18, %v1371_v26 }
 0x21d   :  { %v1398_v40 = vmax.f32 %v1385_v13, 0.0 }
 0x21e   :  { %v1199_v19 = vpop.f32.mrf.mxu1 }
 0x21f   :  { %v1411_v20 = vpack.c.bf16 %v1398_v40, %v1398_v40  ;;  %v1232_v21 = vadd.f32 %v1199_v19, %v1117_v28  ;;  %v3130_v40 = vld [vmem:[%s3885_s3 + $0x90] sm:$0xff]  ;;  %v559_v28 = vadd.f32 %v3498_v48, %v3492_v42 }
 0x221   :  { %1424 = vst.msk [vmem:[#allocation2] sm:$0xf] %vm175_vm2, %v1411_v20  ;;  %v1372_v27 = vadd.f32 %v1339_v58, %v1232_v21  ;;  %v1344_v36 = vpop.f32.mrf.mxu2  ;;  %v3134_v21 = vld [vmem:[%s3885_s3 + $0xb0] sm:$0xff]  ;;  %v713_v37 = vadd.f32 %v3597_v59, %v559_v28 }
 0x223   :  { %v1386_v34 = vadd.f32 %v3658_v18, %v1372_v27  ;;  %v3149_v27 = vld [vmem:[%s3885_s3 + $0x128] sm:$0xff] }
 0x225   :  { %v1399_v39 = vmax.f32 %v1386_v34, 0.0 }
 0x226   :  { %v1202_v44 = vpop.f32.mrf.mxu1 }
 0x227   :  { %v1412_v52 = vpack.c.bf16 %v1399_v39, %v1399_v39  ;;  %v1233_v43 = vadd.f32 %v1202_v44, %v1118_v3  ;;  %v3148_v39 = vld [vmem:[%s3885_s3 + $0x120] sm:$0xff]  ;;  %v853_v3 = vadd.f32 %v3580_v46, %v713_v37  ;;  %v3139_v46 = vld [vmem:[%s3885_s3 + $0xd8] sm:$0xff] }
 0x228   :  { %v1442_v32 = vld [vmem:[#allocation2] sm:$0x2]  ;;  %v1486_v54 = vld [vmem:[#allocation2] sm:$0x8]  ;;  %v1480_v6 = vld [vmem:[#allocation2] sm:$0x4] }
 0x229   :  { %1425 = vst.msk [vmem:[#allocation2 + $0x4] sm:$0xf] %vm175_vm2, %v1412_v52  ;;  %v1373_v51 = vadd.f32 %v1342_v23, %v1233_v43  ;;  %v1347_v55 = vpop.f32.mrf.mxu2  ;;  %v1449_v45 = vunpack.c.l.b16 %v1442_v32  ;;  %v1493_v56 = vunpack.c.l.b16 %v1486_v54  ;;  %v2027_v58 = vunpack.c.l.b16 %v1480_v6  ;;  %v3135_v23 = vld [vmem:[%s3885_s3 + $0xb8] sm:$0xff]  ;;  %v3153_v32 = vld [vmem:[%s3885_s3 + $0x148] sm:$0xff] }
 0x22a   :  { %v968_v52 = vadd.f32 %v3601_v62, %v853_v3  ;;  %v3143_v62 = vld [vmem:[%s3885_s3 + $0xf8] sm:$0xff] }
 0x22b   :  { %v1387_v7 = vadd.f32 %v3658_v18, %v1373_v51  ;;  %v1450_v24 = vpack.c.b16 %v1449_v45, %v1449_v45  ;;  %v1494_v0 = vpack.c.b16 %v1493_v56, %v1493_v56  ;;  %v2028_v4 = vpack.c.b16 %v2027_v58, %v2027_v58 }
 0x22d   :  { %v1400_v49 = vmax.f32 %v1387_v7, 0.0  ;;  %v1451_v38 = vrot.slane %v1450_v24, 1  ;;  %v1495_v10 = vrot.slane %v1494_v0, 3  ;;  %v2029_v26 = vrot.slane %v2028_v4, 2  ;;  %v3152_v7 = vld [vmem:[%s3885_s3 + $0x140] sm:$0xff] }
 0x22e   :  { %v1204_v13 = vpop.f32.mrf.mxu1  ;;  %v561_v4 = vadd.f32 %v3510_v9, %v3507_v2 }
 0x22f   :  { %v1413_v31 = vpack.c.bf16 %v1400_v49, %v1400_v49  ;;  %v1234_v14 = vadd.f32 %v1204_v13, %v1119_v5  ;;  %2750 = vmatmul.msk.bf16.vlgmr.msra.gmra.mxu3 %vm304_vm3, %v1451_v38  ;;  %2767 = vmatmul.msk.bf16.vlgmr.msra.gmra.mxu0 %vm304_vm3, %v1495_v10 }
 0x230   :  { %2968 = vmatmul.msk.bf16.vlgmr.msrb.gmra.mxu1 %vm304_vm3, %v2029_v26  ;;  %v1524_v57 = vld [vmem:[#allocation2 + $0x4] sm:$0x1]  ;;  %1649 = vmatpush.bf16.msra.mxu3 %v3131_v47  ;;  %v1530_v63 = vld [vmem:[#allocation2 + $0x4] sm:$0x8]  ;;  %v3142_v47 = vld [vmem:[%s3885_s3 + $0xf0] sm:$0xff]  ;;  %v715_v26 = vadd.f32 %v3613_v25, %v561_v4 }
 0x231   :  { %1426 = vst.msk [vmem:[#allocation2 + $0x8] sm:$0xf] %vm175_vm2, %v1413_v31  ;;  %v1374_v19 = vadd.f32 %v1344_v36, %v1234_v14  ;;  %v1349_v20 = vpop.f32.mrf.mxu2  ;;  %2977 = vmatmul.msk.bf16.vlgmr.msrb.gmra.mxu2 %vm304_vm3, %v1524_v57  ;;  %1693 = vmatpush.bf16.msra.mxu0 %v3135_v23  ;;  %v1120_v36 = vadd.f32 %v3552_v1, %v3595_v22  ;;  %v1537_v34 = vunpack.c.l.b16 %v1530_v63 }
 0x232   :  { %2291 = vmatpush.bf16.msrb.mxu1 %v3149_v27  ;;  %2319 = vmatpush.bf16.msrb.mxu2 %v3153_v32  ;;  %v1122_v31 = vadd.f32 %v3574_v35, %v3611_v60 }
 0x233   :  { %v1388_v42 = vadd.f32 %v3658_v18, %v1374_v19  ;;  %v1538_v1 = vpack.c.b16 %v1537_v34, %v1537_v34  ;;  %v855_v19 = vadd.f32 %v3599_v61, %v715_v26  ;;  %v3147_v61 = vld [vmem:[%s3885_s3 + $0x118] sm:$0xff]  ;;  %v3154_v26 = vld [vmem:[%s3885_s3 + $0x150] sm:$0xff] }
 0x234   :  { %1650 = vmatpush.bf16.msra.mxu3 %v3130_v40 }
 0x235   :  { %v1401_v48 = vmax.f32 %v1388_v42, 0.0  ;;  %1694 = vmatpush.bf16.msra.mxu0 %v3134_v21  ;;  %v1539_v45 = vrot.slane %v1538_v1, 3  ;;  %v970_v25 = vadd.f32 %v3615_v15, %v855_v19 }
 0x236   :  { %v1207_v41 = vpop.f32.mrf.mxu1  ;;  %2292 = vmatpush.bf16.msrb.mxu1 %v3148_v39  ;;  %2320 = vmatpush.bf16.msrb.mxu2 %v3152_v7 }
 0x237   :  { %v1414_v44 = vpack.c.bf16 %v1401_v48, %v1401_v48  ;;  %v1235_v8 = vadd.f32 %v1207_v41, %v1120_v36  ;;  %v3151_v36 = vld [vmem:[%s3885_s3 + $0x138] sm:$0xff]  ;;  %v1123_v34 = vadd.f32 %v3584_v17, %v970_v25 }
 0x238   :  { %v1574_v59 = vld [vmem:[#allocation2 + $0x8] sm:$0x2]  ;;  %v1618_v2 = vld [vmem:[#allocation2 + $0x8] sm:$0x8] }
 0x239   :  { %1427 = vst.msk [vmem:[#allocation2 + $0xc] sm:$0xf] %vm175_vm2, %v1414_v44  ;;  %v1375_v43 = vadd.f32 %v1347_v55, %v1235_v8  ;;  %v1352_v50 = vpop.f32.mrf.mxu2  ;;  %v1581_v22 = vunpack.c.l.b16 %v1574_v59  ;;  %v1121_v55 = vadd.f32 %v3560_v16, %v968_v52  ;;  %v3138_v16 = vld [vmem:[%s3885_s3 + $0xd0] sm:$0xff]  ;;  %v1625_v40 = vunpack.c.l.b16 %v1618_v2 }
 0x23a   :  { %v3146_v59 = vld [vmem:[%s3885_s3 + $0x110] sm:$0xff] }
 0x23b   :  { %v1389_v54 = vadd.f32 %v3658_v18, %v1375_v43  ;;  %v1582_v6 = vpack.c.b16 %v1581_v22, %v1581_v22  ;;  %v1626_v60 = vpack.c.b16 %v1625_v40, %v1625_v40  ;;  %v3150_v52 = vld [vmem:[%s3885_s3 + $0x130] sm:$0xff] }
 0x23c   :  { %v3158_v2 = vld [vmem:[%s3885_s3 + $0x170] sm:$0xff] }
 0x23d   :  { %v1402_v51 = vmax.f32 %v1389_v54, 0.0  ;;  %v1583_v56 = vrot.slane %v1582_v6, 1  ;;  %v1627_v41 = vrot.slane %v1626_v60, 3  ;;  %v1124_v54 = vadd.f32 %v3593_v12, %v3623_v30  ;;  %v3155_v12 = vld [vmem:[%s3885_s3 + $0x158] sm:$0xff]  ;;  %v3113_v60 = vld [vmem:[%s3885_s3 + $0x8] sm:$0xff] }
 0x23e   :  { %v1209_v58 = vpop.f32.mrf.mxu1  ;;  %v3159_v30 = vld [vmem:[%s3885_s3 + $0x178] sm:$0xff] }
 0x23f   :  { %v1415_v24 = vpack.c.bf16 %v1402_v51, %v1402_v51  ;;  %v1236_v0 = vadd.f32 %v1209_v58, %v1121_v55  ;;  %2784 = vmatmul.msk.bf16.vlgmr.msrb.gmra.mxu3 %vm304_vm3, %v1539_v45  ;;  %2801 = vmatmul.msk.bf16.vlgmr.msrb.gmra.mxu0 %vm304_vm3, %v1583_v56 }
 0x240   :  { %v1656_v5 = vld [vmem:[#allocation2 + $0xc] sm:$0x4]  ;;  %1737 = vmatpush.bf16.msrb.mxu3 %v3139_v46  ;;  %1781 = vmatpush.bf16.msrb.mxu0 %v3143_v62  ;;  %v1662_v9 = vld [vmem:[#allocation2 + $0xc] sm:$0x8] }
 0x241   :  { %1428 = vst.msk [vmem:[#allocation2 + $0x10] sm:$0xf] %vm175_vm2, %v1415_v24  ;;  %v1376_v49 = vadd.f32 %v1349_v20, %v1236_v0  ;;  %v1354_v38 = vpop.f32.mrf.mxu2  ;;  %v2147_v10 = vunpack.c.l.b16 %v1656_v5  ;;  %v1669_v28 = vunpack.c.l.b16 %v1662_v9 }
 0x243   :  { %v1390_v23 = vadd.f32 %v3658_v18, %v1376_v49  ;;  %v2148_v13 = vpack.c.b16 %v2147_v10, %v2147_v10  ;;  %v1670_v42 = vpack.c.b16 %v1669_v28, %v1669_v28 }
 0x244   :  { %1738 = vmatpush.bf16.msrb.mxu3 %v3138_v16  ;;  %1782 = vmatpush.bf16.msrb.mxu0 %v3142_v47 }
 0x245   :  { %v1403_v14 = vmax.f32 %v1390_v23, 0.0  ;;  %v2149_v57 = vrot.slane %v2148_v13, 2  ;;  %v1671_v39 = vrot.slane %v1670_v42, 3 }
 0x246   :  { %v1212_v20 = vpop.f32.mrf.mxu1 }
 0x247   :  { %v1416_v21 = vpack.c.bf16 %v1403_v14, %v1403_v14  ;;  %v1237_v63 = vadd.f32 %v1212_v20, %v1122_v31  ;;  %3004 = vmatmul.msk.bf16.vlgmr.msra.gmra.mxu1 %vm304_vm3, %v2149_v57 }
 0x248   :  { %v1700_v27 = vld [vmem:[#allocation2 + $0x10] sm:$0x1] }
 0x249   :  { %1429 = vst.msk [vmem:[#allocation2 + $0x14] sm:$0xf] %vm175_vm2, %v1416_v21  ;;  %v1377_v37 = vadd.f32 %v1352_v50, %v1237_v63  ;;  %v1357_v35 = vpop.f32.mrf.mxu2  ;;  %3013 = vmatmul.msk.bf16.vlgmr.msra.gmra.mxu2 %vm304_vm3, %v1700_v27  ;;  %v1706_v50 = vld [vmem:[#allocation2 + $0x10] sm:$0x2] }
 0x24a   :  { %v1713_v6 = vunpack.c.l.b16 %v1706_v50 }
 0x24b   :  { %v1391_v48 = vadd.f32 %v3658_v18, %v1377_v37 }
 0x24c   :  { %v1714_v58 = vpack.c.b16 %v1713_v6, %v1713_v6 }
 0x24d   :  { %v1404_v15 = vmax.f32 %v1391_v48, 0.0 }
 0x24e   :  { %v1214_v3 = vpop.f32.mrf.mxu1  ;;  %v1715_v5 = vrot.slane %v1714_v58, 1  ;;  %v3128_v58 = vld [vmem:[%s3885_s3 + $0x80] sm:$0xff] }
 0x24f   :  { %v1417_v44 = vpack.c.bf16 %v1404_v15, %v1404_v15  ;;  %v1238_v8 = vadd.f32 %v1214_v3, %v1123_v34  ;;  %2818 = vmatmul.msk.bf16.vlgmr.msra.gmra.mxu3 %vm304_vm3, %v1627_v41  ;;  %2835 = vmatmul.msk.bf16.vlgmr.msra.gmra.mxu0 %vm304_vm3, %v1671_v39  ;;  %v3160_v34 = vld [vmem:[%s3885_s3 + $0x180] sm:$0xff] }
 0x250   :  { %1825 = vmatpush.bf16.msra.mxu3 %v3147_v61  ;;  %1869 = vmatpush.bf16.msra.mxu0 %v3151_v36  ;;  %v1750_v1 = vld [vmem:[#allocation2 + $0x14] sm:$0x2]  ;;  %v1794_v23 = vld [vmem:[#allocation2 + $0x14] sm:$0x8]  ;;  %v3112_v41 = vld [vmem:[%s3885_s3] sm:$0xff] }
 0x251   :  { %1430 = vst.msk [vmem:[#allocation2 + $0x18] sm:$0xf] %vm175_vm2, %v1417_v44  ;;  %v1378_v17 = vadd.f32 %v1354_v38, %v1238_v8  ;;  %v1359_v43 = vpop.f32.mrf.mxu2  ;;  %v1757_v46 = vunpack.c.l.b16 %v1750_v1  ;;  %v1801_v57 = vunpack.c.l.b16 %v1794_v23 }
 0x253   :  { %v1392_v22 = vadd.f32 %v3658_v18, %v1378_v17  ;;  %v1758_v7 = vpack.c.b16 %v1757_v46, %v1757_v46  ;;  %v1802_v63 = vpack.c.b16 %v1801_v57, %v1801_v57  ;;  %v3125_v46 = vld [vmem:[%s3885_s3 + $0x68] sm:$0xff] }
 0x254   :  { %1826 = vmatpush.bf16.msra.mxu3 %v3146_v59  ;;  %1870 = vmatpush.bf16.msra.mxu0 %v3150_v52 }
 0x255   :  { %v1405_v32 = vmax.f32 %v1392_v22, 0.0  ;;  %v1759_v16 = vrot.slane %v1758_v7, 1  ;;  %v1803_v48 = vrot.slane %v1802_v63, 3  ;;  %v3141_v7 = vld [vmem:[%s3885_s3 + $0xe8] sm:$0xff] }
 0x256   :  { %v1217_v62 = vpop.f32.mrf.mxu1 }
 0x257   :  { %v1418_v51 = vpack.c.bf16 %v1405_v32, %v1405_v32  ;;  %v1239_v55 = vadd.f32 %v1217_v62, %v1124_v54  ;;  %v3129_v62 = vld [vmem:[%s3885_s3 + $0x88] sm:$0xff] }
 0x258   :  { %v1832_v45 = vld [vmem:[#allocation2 + $0x18] sm:$0x1]  ;;  %v1838_v13 = vld [vmem:[#allocation2 + $0x18] sm:$0x2] }
 0x259   :  { %1431 = vst.msk [vmem:[#allocation2 + $0x1c] sm:$0xf] %vm175_vm2, %v1418_v51  ;;  %v1379_v56 = vadd.f32 %v1357_v35, %v1239_v55  ;;  %3040 = vmatmul.msk.bf16.vlgmr.msrb.gmra.mxu1 %vm304_vm3, %v1832_v45  ;;  %v1362_v24 = vpop.f32.mrf.mxu2  ;;  %v1845_v40 = vunpack.c.l.b16 %v1838_v13  ;;  %v3161_v35 = vld [vmem:[%s3885_s3 + $0x188] sm:$0xff] }
 0x25b   :  { %v1393_v0 = vadd.f32 %v3658_v18, %v1379_v56  ;;  %v1846_v25 = vpack.c.b16 %v1845_v40, %v1845_v40 }
 0x25d   :  { %v1406_v4 = vmax.f32 %v1393_v0, 0.0  ;;  %v1847_v61 = vrot.slane %v1846_v25, 1 }
 0x25e   :  { %v1219_v47 = vpop.f32.mrf.mxu1 }
 0x25f   :  { %v1419_v49 = vpack.c.bf16 %v1406_v4, %v1406_v4  ;;  %v1240_v38 = vadd.f32 %v1219_v47, %v3629_v11  ;;  %2852 = vmatmul.msk.bf16.vlgmr.msrb.gmra.mxu3 %vm304_vm3, %v1715_v5  ;;  %2869 = vmatmul.msk.bf16.vlgmr.msrb.gmra.mxu0 %vm304_vm3, %v1759_v16  ;;  %v3144_v4 = vld [vmem:[%s3885_s3 + $0x100] sm:$0xff]  ;;  %v1612_v5 = vld [vmem:[#allocation2 + $0x8] sm:$0x4] }
 0x260   :  { %v1876_v10 = vld [vmem:[#allocation2 + $0x1c] sm:$0x1]  ;;  %1913 = vmatpush.bf16.msrb.mxu3 %v3155_v12  ;;  %1957 = vmatpush.bf16.msrb.mxu0 %v3159_v30  ;;  %v1882_v44 = vld [vmem:[#allocation2 + $0x1c] sm:$0x2]  ;;  %v1437_v12 = vld [vmem:[#allocation2] sm:$0x1]  ;;  %v2115_v16 = vunpack.c.l.b16 %v1612_v5 }
 0x261   :  { %1432 = vst.msk [vmem:[#allocation2 + $0x20] sm:$0xf] %vm175_vm2, %v1419_v49  ;;  %v1380_v9 = vadd.f32 %v1359_v43, %v1240_v38  ;;  %3049 = vmatmul.msk.bf16.vlgmr.msrb.gmra.mxu2 %vm304_vm3, %v1876_v10  ;;  %v1364_v11 = vpop.f32.mrf.mxu2  ;;  %v1889_v52 = vunpack.c.l.b16 %v1882_v44  ;;  %v3140_v30 = vld [vmem:[%s3885_s3 + $0xe0] sm:$0xff]  ;;  %v3157_v49 = vld [vmem:[%s3885_s3 + $0x168] sm:$0xff] }
 0x262   :  { %v2116_v47 = vpack.c.b16 %v2115_v16, %v2115_v16  ;;  %v1568_v10 = vld [vmem:[#allocation2 + $0x8] sm:$0x1] }
 0x263   :  { %v1394_v31 = vadd.f32 %v3658_v18, %v1380_v9  ;;  %v1890_v32 = vpack.c.b16 %v1889_v52, %v1889_v52  ;;  %v1788_v9 = vld [vmem:[#allocation2 + $0x14] sm:$0x4] }
 0x264   :  { %1914 = vmatpush.bf16.msrb.mxu3 %v3154_v26  ;;  %1958 = vmatpush.bf16.msrb.mxu0 %v3158_v2  ;;  %v2117_v38 = vrot.slane %v2116_v47, 2  ;;  %v3156_v26 = vld [vmem:[%s3885_s3 + $0x160] sm:$0xff]  ;;  %v1744_v2 = vld [vmem:[#allocation2 + $0x10] sm:$0x4]  ;;  %v2239_v23 = vunpack.c.l.b16 %v1788_v9 }
 0x265   :  { %v1407_v14 = vmax.f32 %v1394_v31, 0.0  ;;  %v1891_v55 = vrot.slane %v1890_v32, 1 }
 0x266   :  { %v1222_v28 = vpop.f32.mrf.mxu1  ;;  %v2240_v31 = vpack.c.b16 %v2239_v23, %v2239_v23 }
 0x267   :  { %v1420_v19 = vpack.c.bf16 %v1407_v14, %v1407_v14  ;;  %v1241_v20 = vadd.f32 %v1222_v28, %v3634_v33 }
 0x268   :  { %v1964_v0 = vld [vmem:[#allocation2 + $0x20] sm:$0x1]  ;;  %v2241_v28 = vrot.slane %v2240_v31, 2 }
 0x269   :  { %1433 = vst.msk [vmem:[#allocation2 + $0x24] sm:$0xf] %vm175_vm2, %v1420_v19  ;;  %v1381_v21 = vadd.f32 %v1362_v24, %v1241_v20  ;;  %v1367_v27 = vpop.f32.mrf.mxu2  ;;  %v3145_v24 = vld [vmem:[%s3885_s3 + $0x108] sm:$0xff] }
 0x26b   :  { %v1395_v37 = vadd.f32 %v3658_v18, %v1381_v21  ;;  %v1920_v21 = vld [vmem:[#allocation2 + $0x1c] sm:$0x4] }
 0x26d   :  { %v1408_v42 = vmax.f32 %v1395_v37, 0.0  ;;  %v2327_v37 = vunpack.c.l.b16 %v1920_v21 }
 0x26e   :  { %v1224_v33 = vpop.f32.mrf.mxu1 }
 0x26f   :  { %v1421_v36 = vpack.c.bf16 %v1408_v42, %v1408_v42  ;;  %v1242_v15 = vadd.f32 %v1224_v33, %v3637_v53  ;;  %2886 = vmatmul.msk.bf16.vlgmr.msra.gmra.mxu3 %vm304_vm3, %v1803_v48  ;;  %2903 = vmatmul.msk.bf16.vlgmr.msra.gmra.mxu0 %vm304_vm3, %v1847_v61  ;;  %v1926_v53 = vld [vmem:[#allocation2 + $0x1c] sm:$0x8] }
 0x270   :  { %1991 = vmatpush.bf16.msra.mxu3 %v3161_v35  ;;  %2019 = vmatpush.bf16.msra.mxu0 %v3113_v60  ;;  %v1933_v17 = vunpack.c.l.b16 %v1926_v53  ;;  %v2328_v35 = vpack.c.b16 %v2327_v37, %v2327_v37 }
 0x271   :  { %1434 = vst.msk [vmem:[#allocation2 + $0x28] sm:$0xf] %vm175_vm2, %v1421_v36  ;;  %v1382_v39 = vadd.f32 %v1364_v11, %v1242_v15  ;;  %v1369_v3 = vpop.f32.mrf.mxu2  ;;  %v2207_v11 = vunpack.c.l.b16 %v1744_v2 }
 0x272   :  { %v1934_v54 = vpack.c.b16 %v1933_v17, %v1933_v17  ;;  %v2329_v61 = vrot.slane %v2328_v35, 2 }
 0x273   :  { %v1396_v8 = vadd.f32 %v3658_v18, %v1382_v39  ;;  %v2208_v13 = vpack.c.b16 %v2207_v11, %v2207_v11 }
 0x274   :  { %1992 = vmatpush.bf16.msra.mxu3 %v3160_v34  ;;  %2020 = vmatpush.bf16.msra.mxu0 %v3112_v41  ;;  %v1935_v45 = vrot.slane %v1934_v54, 3 }
 0x275   :  { %v1409_v59 = vmax.f32 %v1396_v8, 0.0  ;;  %v2209_v40 = vrot.slane %v2208_v13, 2 }
 0x276   :  { %v1227_v43 = vpop.f32.mrf.mxu1 }
 0x277   :  { %v1422_v50 = vpack.c.bf16 %v1409_v59, %v1409_v59  ;;  %v1243_v1 = vadd.f32 %v1227_v43, %v3651_v29 }
 0x279   :  { %1435 = vst.msk [vmem:[#allocation2 + $0x2c] sm:$0xf] %vm175_vm2, %v1422_v50  ;;  %v1383_v22 = vadd.f32 %v1367_v27, %v1243_v1 }
 0x27b   :  { %v1397_v6 = vadd.f32 %v3658_v18, %v1383_v22  ;;  %v3124_v18 = vld [vmem:[%s3885_s3 + $0x60] sm:$0xff] }
 0x27d   :  { %v1410_v51 = vmax.f32 %v1397_v6, 0.0 }
 0x27e   :  { %v1229_v56 = vpop.f32.mrf.mxu1 }
 0x27f   :  { %v1423_v29 = vpack.c.bf16 %v1410_v51, %v1410_v51  ;;  %2920 = vmatmul.msk.bf16.vlgmr.msrb.gmra.mxu3 %vm304_vm3, %v1891_v55  ;;  %2937 = vmatmul.msk.bf16.vlgmr.msrb.gmra.mxu0 %vm304_vm3, %v1935_v45 }
 0x280   :  { %2107 = vmatpush.bf16.msrb.mxu3 %v3125_v46  ;;  %2139 = vmatpush.bf16.msrb.mxu0 %v3129_v62 }
 0x281   :  { %1436 = vst.msk [vmem:[#allocation2 + $0x30] sm:$0x1] %vm192_vm6, %v1423_v29 }
 0x284   :  { %2108 = vmatpush.bf16.msrb.mxu3 %v3124_v18  ;;  %2140 = vmatpush.bf16.msrb.mxu0 %v3128_v58 }
 0x28f   :  { %2950 = vmatmul.msk.bf16.vlgmr.msra.gmra.mxu3 %vm304_vm3, %v1964_v0  ;;  %2959 = vmatmul.msk.bf16.vlgmr.msra.gmra.mxu0 %vm304_vm3, %v1437_v12 }
 0x290   :  { %2231 = vmatpush.bf16.msra.mxu3 %v3141_v7  ;;  %2263 = vmatpush.bf16.msra.mxu0 %v3145_v24 }
 0x294   :  { %2232 = vmatpush.bf16.msra.mxu3 %v3140_v30  ;;  %2264 = vmatpush.bf16.msra.mxu0 %v3144_v4 }
 0x29f   :  { %2986 = vmatmul.msk.bf16.vlgmr.msrb.gmra.mxu3 %vm304_vm3, %v1568_v10  ;;  %2995 = vmatmul.msk.bf16.vlgmr.msrb.gmra.mxu0 %vm304_vm3, %v2117_v38 }
 0x2a0   :  { %2351 = vmatpush.bf16.msrb.mxu3 %v3157_v49 }
 0x2a4   :  { %2352 = vmatpush.bf16.msrb.mxu3 %v3156_v26 }
 0x2ac   :  { %v1520_v14 = vpop.f32.mrf.mxu0 }
 0x2ad   :  { %v2054_v57 = vpop.f32.mrf.mxu1 }
 0x2ae   :  { %v2055_v19 = vadd.f32 %v2054_v57, %v1520_v14 }
 0x2af   :  { %3022 = vmatmul.msk.bf16.vlgmr.msra.gmra.mxu3 %vm304_vm3, %v2209_v40  ;;  %3031 = vmatmul.msk.bf16.vlgmr.msra.gmra.mxu0 %vm304_vm3, %v2241_v28 }
 0x2b2   :  { %v1476_v20 = vpop.f32.mrf.mxu3 }
 0x2b4   :  { %v1522_v63 = vpop.f32.mrf.mxu0  ;;  %v2082_v25 = vpop.f32.mrf.mxu2 }
 0x2b5   :  { %v2056_v27 = vpop.f32.mrf.mxu1 }
 0x2ba   :  { %v1478_v60 = vpop.f32.mrf.mxu3 }
 0x2bc   :  { %v1608_v42 = vpop.f32.mrf.mxu0  ;;  %v2084_v48 = vpop.f32.mrf.mxu2 }
 0x2bd   :  { %v3179_v48 = vld [vmem:[%s3886_s4 + $0x2] ss:$0 sm:$0xff] }
 0x2bf   :  { %3058 = vmatmul.msk.bf16.vlgmr.msrb.gmra.mxu3 %vm304_vm3, %v2329_v61 }
 0x2c2   :  { %v1564_v33 = vpop.f32.mrf.mxu3 }
 0x2c3   :  { %v2083_v36 = vadd.f32 %v2082_v25, %v1564_v33 }
 0x2c4   :  { %v1610_v15 = vpop.f32.mrf.mxu0  ;;  %v2174_v34 = vpop.f32.mrf.mxu1 }
 0x2ca   :  { %v1566_v41 = vpop.f32.mrf.mxu3 }
 0x2cc   :  { %v1696_v39 = vpop.f32.mrf.mxu0  ;;  %v2176_v3 = vpop.f32.mrf.mxu1 }
 0x2cd   :  { %v2175_v44 = vadd.f32 %v2174_v34, %v1696_v39  ;;  %v2202_v53 = vpop.f32.mrf.mxu2  ;;  %v3215_v34 = vmov 32.0  }
 0x2ce   :  { %3182 = vrcp.f32 %v3215_v34 }
 0x2d2   :  { %v1652_v8 = vpop.f32.mrf.mxu3 }
 0x2d4   :  { %v1698_v59 = vpop.f32.mrf.mxu0  ;;  %v3183_v41 = vpop.eup %3182 }
 0x2d5   :  { %v2204_v52 = vpop.f32.mrf.mxu2  ;;  %v2377_v39 = vmul.f32 32.0, %v3183_v41  ;;  %vm2381_vm9 = vweird.f32 %v3183_v41 }
 0x2d6   :  { %v2294_v17 = vpop.f32.mrf.mxu1 }
 0x2d7   :  { %v2378_v3 = vsub.f32 1.0, %v2377_v39 }
 0x2da   :  { %v1654_v43 = vpop.f32.mrf.mxu3 }
 0x2dc   :  { %v1784_v50 = vpop.f32.mrf.mxu0 }
 0x2de   :  { %v2296_v1 = vpop.f32.mrf.mxu1 }
 0x2e2   :  { %v1740_v22 = vpop.f32.mrf.mxu3 }
 0x2e3   :  { %v2203_v32 = vadd.f32 %v2202_v53, %v1740_v22 }
 0x2e4   :  { %v1786_v54 = vpop.f32.mrf.mxu0  ;;  %v2322_v6 = vpop.f32.mrf.mxu2 }
 0x2ea   :  { %v1742_v46 = vpop.f32.mrf.mxu3 }
 0x2ec   :  { %v1872_v62 = vpop.f32.mrf.mxu0  ;;  %v2324_v51 = vpop.f32.mrf.mxu2 }
 0x2ed   :  { %v2295_v55 = vadd.f32 %v2294_v17, %v1872_v62 }
 0x2f2   :  { %v1828_v45 = vpop.f32.mrf.mxu3 }
 0x2f4   :  { %v1874_v56 = vpop.f32.mrf.mxu0 }
 0x2fa   :  { %v1830_v29 = vpop.f32.mrf.mxu3 }
 0x2fc   :  { %v1960_v18 = vpop.f32.mrf.mxu0 }
 0x302   :  { %v1916_v58 = vpop.f32.mrf.mxu3 }
 0x303   :  { %v2323_v7 = vadd.f32 %v2322_v6, %v1916_v58 }
 0x304   :  { %v1962_v24 = vpop.f32.mrf.mxu0 }
 0x30a   :  { %v1918_v0 = vpop.f32.mrf.mxu3 }
 0x30c   :  { %v2022_v12 = vpop.f32.mrf.mxu0 }
 0x30d   :  { %v2023_v47 = vadd.f32 %v2022_v12, %v1476_v20 }
 0x30f   :  { %v2358_v26 = vadd.f32 %v2055_v19, %v2023_v47 }
 0x312   :  { %v1994_v30 = vpop.f32.mrf.mxu3 }
 0x314   :  { %v2024_v4 = vpop.f32.mrf.mxu0 }
 0x31a   :  { %v1996_v5 = vpop.f32.mrf.mxu3 }
 0x31c   :  { %v2142_v16 = vpop.f32.mrf.mxu0 }
 0x31d   :  { %v2143_v14 = vadd.f32 %v2142_v16, %v1652_v8 }
 0x31f   :  { %v2360_v21 = vadd.f32 %v2175_v44, %v2143_v14  ;;  %v2379_v44 = vmul.f32 %v3183_v41, %v2378_v3 }
 0x321   :  { %v2380_v53 = vadd.f32 %v3183_v41, %v2379_v44 }
 0x322   :  { %v2110_v49 = vpop.f32.mrf.mxu3 }
 0x323   :  { %v2111_v38 = vadd.f32 %v2110_v49, %v1608_v42  ;;  %v2382_v8 = vsel %vm2381_vm9, %v3183_v41, %v2380_v53 }
 0x324   :  { %v2144_v10 = vpop.f32.mrf.mxu0 }
 0x325   :  { %v2359_v2 = vadd.f32 %v2111_v38, %v2083_v36 }
 0x327   :  { %v2364_v9 = vadd.f32 %v2359_v2, %v2358_v26 }
 0x32a   :  { %v2112_v11 = vpop.f32.mrf.mxu3 }
 0x32c   :  { %v2266_v23 = vpop.f32.mrf.mxu0 }
 0x32d   :  { %v2267_v13 = vadd.f32 %v2266_v23, %v1828_v45  ;;  %v3180_v45 = vld [vmem:[%s3886_s4 + $0x3] ss:$0 sm:$0xff] }
 0x32f   :  { %v2362_v31 = vadd.f32 %v2295_v55, %v2267_v13 }
 0x332   :  { %v2234_v57 = vpop.f32.mrf.mxu3 }
 0x333   :  { %v2235_v40 = vadd.f32 %v2234_v57, %v1784_v50 }
 0x334   :  { %v2268_v28 = vpop.f32.mrf.mxu0 }
 0x335   :  { %v2361_v63 = vadd.f32 %v2235_v40, %v2203_v32 }
 0x337   :  { %v2365_v25 = vadd.f32 %v2361_v63, %v2360_v21 }
 0x339   :  { %v2367_v27 = vadd.f32 %v2365_v25, %v2364_v9 }
 0x33a   :  { %v2236_v37 = vpop.f32.mrf.mxu3 }
 0x342   :  { %v2354_v20 = vpop.f32.mrf.mxu3 }
 0x343   :  { %v2355_v35 = vadd.f32 %v2354_v20, %v1960_v18  ;;  %v3181_v18 = vld [vmem:[%s3886_s4 + $0x4] ss:$0 sm:$0xff] }
 0x345   :  { %v2363_v60 = vadd.f32 %v2355_v35, %v2323_v7 }
 0x347   :  { %v2366_v42 = vadd.f32 %v2363_v60, %v2362_v31 }
 0x349   :  { %v2368_v19 = vadd.f32 %v2366_v42, %v1994_v30 }
 0x34a   :  { %v2356_v61 = vpop.f32.mrf.mxu3 }
 0x34b   :  { %v2369_v33 = vadd.f32 %v2368_v19, %v2367_v27 }
 0x34d   :  { %v2371_v36 = vadd.f32 %v3179_v48, %v2369_v33 }
 0x34f   :  { %v2373_v15 = vsel %vm2372_vm8, %v2371_v36, 0.0 }
 0x350   :  { %2374 = vadd.xlane.f32.xlu0 %v2373_v15 }
 0x3c3   :  { %v2375_v59 = vpop.xlane.xlu0 %2374 }
 0x3c4   :  { %v2383_v52 = vmul.f32 %v2382_v8, %v2375_v59 }
 0x3c6   :  { %v2384_v17 = vsub.f32 %v2371_v36, %v2383_v52 }
 0x3c8   :  { %v2385_v43 = vmul.f32 %v2384_v17, %v2384_v17 }
 0x3ca   :  { %v2386_v50 = vsel %vm2372_vm8, %v2385_v43, 0.0 }
 0x3cb   :  { %2387 = vadd.xlane.f32.xlu0 %v2386_v50 }
 0x43e   :  { %v2388_v1 = vpop.xlane.xlu0 %2387 }
 0x43f   :  { %v2389_v22 = vmul.f32 %v2388_v1, %v2382_v8 }
 0x441   :  { %v2390_v32 = vadd.f32 1e-05, %v2389_v22 }
 0x443   :  { %3184 = vrsqrt.f32 %v2390_v32  ;;  %vm2397_vm11 = vweird.f32 %v2390_v32 }
 0x449   :  { %v3185_v54 = vpop.eup %3184 }
 0x44a   :  { %v2392_v6 = vmul.f32 %v3185_v54, %v2390_v32  ;;  %vm2398_vm10 = vweird.f32 %v3185_v54 }
 0x44b   :  { %vm2399_vm12 = vmor %vm2397_vm11, %vm2398_vm10 }
 0x44c   :  { %v2393_v46 = vmul.f32 %v3185_v54, %v2392_v6 }
 0x44e   :  { %v2394_v62 = vmul.f32 0.5, %v2393_v46 }
 0x450   :  { %v2395_v51 = vsub.f32 1.5, %v2394_v62 }
 0x452   :  { %v2396_v55 = vmul.f32 %v3185_v54, %v2395_v51 }
 0x454   :  { %v2400_v56 = vsel %vm2399_vm12, %v3185_v54, %v2396_v55 }
 0x455   :  { %v2401_v29 = vmul.f32 %v2400_v56, %v2384_v17 }
 0x457   :  { %v2403_v58 = vmul.f32 %v3180_v45, %v2401_v29 }
 0x459   :  { %v2405_v7 = vadd.f32 %v3181_v18, %v2403_v58 }
 0x45b   :  { %3186 = vtanh.f32 %v2405_v7 }
 0x461   :  { %v3187_v24 = vpop.eup %3186 }
 0x462   :  { %2407 = vst.msk [vmem:[#allocation3] sm:$0x3] %vm2372_vm8, %v3187_v24 }
 0x463   :  { %2418 = dma.vmem_to_hbm [thread:$0]  %s2414_s18, 32, %s2416_s21, [#allocation4]  }
 0x464   :  { %3212 = dma.done.wait [#allocation4], 32  }
 0x465   :  { %3213 = vsyncadd [#allocation4], 4294967264 }
 0x466   :  { %2423 = vsyncpa [#allocation4], 1 }

</bundles_post_ra>
